<compile_context>
chip_gen: v5e
topology: v5e:2x2
jax: 0.10.0
libtpu: 0.0.40
codegen_flags: <defaults>
</compile_context>

<pallas_src>
import functools

import jax
import jax.numpy as jnp
import numpy as np
from jax import lax
from jax.experimental import pallas as pl
from jax.experimental.pallas import tpu as pltpu


def _round_up(x, m):
    return ((x + m - 1) // m) * m


def gru_decoder_kernel(x_ref, h0_ref, w_ih_ref, w_hh_ref, b_ih_ref, b_hh_ref,
                       w_lin_ref, b_lin_ref, out_ref, hT_ref,
                       gi_scr, hs_scr, h_carry, *, seq_len, unroll, mask_tail):
    """One sequence chunk (TS timesteps) of the GRU decoder per grid step."""
    TS, Bp, Ip = x_ref.shape
    Hp = hT_ref.shape[2]
    Op = out_ref.shape[2]
    chunk = pl.program_id(0)
    mm_dtype = w_ih_ref.dtype  # matmul operand dtype (f32 or bf16); accumulation is f32.

    # Initialize the carried hidden state from h0 on the first chunk only.
    @pl.when(chunk == 0)
    def _():
        h_carry[...] = h0_ref[0].astype(jnp.float32)

    # (1) Input-side gate pre-activations for the whole chunk in one MXU matmul:
    #     (TS*Bp, Ip) @ (Ip, 3*Hp) -- gates laid out in lane-aligned 128-wide blocks.
    x2d = x_ref[...].astype(mm_dtype).reshape(TS * Bp, Ip)
    gi_all = jnp.dot(x2d, w_ih_ref[...], preferred_element_type=jnp.float32)
    gi_all = gi_all + b_ih_ref[...].astype(jnp.float32)
    gi_scr[...] = gi_all.reshape(TS, Bp, 3 * Hp)

    w_hh = w_hh_ref[...]                          # (Hp, 3*Hp), resident for the whole loop
    b_hh = b_hh_ref[...].astype(jnp.float32)      # (1, 3*Hp)
    base_t = chunk * TS                           # global timestep offset of this chunk

    # (2) Serial recurrence over the chunk (only the h-dependent matmul stays in the loop).
    def step(t, h_prev):
        gi_t = gi_scr[t]                                                   # (Bp, 3*Hp)
        gh = jnp.dot(h_prev.astype(mm_dtype), w_hh,
                     preferred_element_type=jnp.float32) + b_hh
        # PyTorch GRU gate order: r, z, n -- each a lane-aligned 128-wide slice.
        # sigmoid(x) = 0.5*(1 + tanh(x/2)): one EUP push per gate instead of exp+recip.
        r = 0.5 * (jnp.tanh(0.5 * (gi_t[:, 0:Hp] + gh[:, 0:Hp])) + 1.0)
        z = 0.5 * (jnp.tanh(0.5 * (gi_t[:, Hp:2 * Hp] + gh[:, Hp:2 * Hp])) + 1.0)
        n = jnp.tanh(gi_t[:, 2 * Hp:3 * Hp] + r * gh[:, 2 * Hp:3 * Hp])
        h_new = (1.0 - z) * n + z * h_prev                                 # (Bp, Hp) f32
        if mask_tail:
            # Padded tail timesteps (global index >= seq_len) must not update h.
            keep = ((base_t + t) < seq_len).astype(jnp.float32)
            h_new = keep * h_new + (1.0 - keep) * h_prev
        hs_scr[t] = h_new
        return h_new

    h_last = lax.fori_loop(0, TS, step, h_carry[...], unroll=unroll)
    h_carry[...] = h_last

    # (3) Output projection batched over the chunk; single lane-dense store per chunk.
    hs2d = hs_scr[...].astype(mm_dtype).reshape(TS * Bp, Hp)
    y = jnp.dot(hs2d, w_lin_ref[...], preferred_element_type=jnp.float32)
    y = y + b_lin_ref[...].astype(jnp.float32)
    out_ref[...] = y.reshape(TS, Bp, Op).astype(out_ref.dtype)

    # Cheap (Bp x Hp) write each chunk; hT out_spec is constant so only the final value
    # is written back to HBM.
    hT_ref[0] = h_last.astype(hT_ref.dtype)


def _pad_gate_cols(w, H, Hp):
    """(rows, 3H) -> (rows, 3*Hp): each gate column-block zero-padded to Hp lanes."""
    gates = [jnp.pad(w[:, g * H:(g + 1) * H], ((0, 0), (0, Hp - H))) for g in range(3)]
    return jnp.concatenate(gates, axis=1)


def rnn_decoder_forward(x, h0, params, *, chunk_timesteps=32, use_bf16_weights=False,
                        unroll=4):
    """x: (S, B, I) f32, h0: (1, B, H) f32.  Returns (outputs (S,B,O), hidden (1,B,H))."""
    S, B, I = x.shape
    H = params["w_hh_t"].shape[0]
    O = params["w_lin_t"].shape[1]

    # Pad to (8, 128)-friendly shapes; padding is zeros and is sliced off afterwards.
    Bp = _round_up(B, 8)
    Ip = _round_up(I, 128)
    Hp = _round_up(H, 128)
    Op = _round_up(O, 128)

    # Sequence chunking: TS timesteps per grid step, carried hidden across chunks.
    TS = max(1, min(int(chunk_timesteps), S))
    num_chunks = pl.cdiv(S, TS)
    Sp = num_chunks * TS
    mask_tail = (Sp != S)
    unroll_eff = max(1, min(int(unroll), TS))

    mm_dtype = jnp.bfloat16 if use_bf16_weights else jnp.float32

    x_p = jnp.pad(x, ((0, Sp - S), (0, Bp - B), (0, Ip - I)))
    h0_p = jnp.pad(h0, ((0, 0), (0, Bp - B), (0, Hp - H)))

    w_ih_p = jnp.pad(_pad_gate_cols(params["w_ih_t"], H, Hp),
                     ((0, Ip - I), (0, 0))).astype(mm_dtype)                # (Ip, 3Hp)
    w_hh_p = jnp.pad(_pad_gate_cols(params["w_hh_t"], H, Hp),
                     ((0, Hp - H), (0, 0))).astype(mm_dtype)                # (Hp, 3Hp)
    b_ih_p = _pad_gate_cols(params["b_ih"], H, Hp)                          # (1, 3Hp) f32
    b_hh_p = _pad_gate_cols(params["b_hh"], H, Hp)                          # (1, 3Hp) f32
    w_lin_p = jnp.pad(params["w_lin_t"],
                      ((0, Hp - H), (0, Op - O))).astype(mm_dtype)          # (Hp, Op)
    b_lin_p = jnp.pad(params["b_lin"], ((0, 0), (0, Op - O)))               # (1, Op) f32

    # Cost estimate (on the padded, chunked shapes actually executed).
    flops = int(2 * Sp * Bp * Ip * 3 * Hp        # input-gate matmul (batched over chunk)
                + 2 * Sp * Bp * Hp * 3 * Hp      # recurrent gate matmuls
                + 2 * Sp * Bp * Hp * Op)         # output Linear (batched over chunk)
    transcendentals = int(3 * Sp * Bp * Hp)      # 3 tanh per timestep per hidden lane
    wbytes = (2 if use_bf16_weights else 4)
    bytes_accessed = int(4 * (Sp * Bp * Ip + Bp * Hp + Sp * Bp * Op + Bp * Hp
                              + 2 * 3 * Hp + Op)
                         + wbytes * (Ip * 3 * Hp + Hp * 3 * Hp + Hp * Op))

    # Per-chunk VMEM budget (double-buffered chunk I/O + weights + scratch). Only raise the
    # scoped VMEM limit if we actually exceed the 32 MiB default; cap at 64 MiB for v7x.
    chunk_vmem = (2 * TS * Bp * Ip * 4 + 2 * TS * Bp * Op * 4
                  + 2 * (Ip * 3 * Hp + Hp * 3 * Hp + Hp * Op) * wbytes
                  + 2 * (2 * 3 * Hp + Op + 2 * Bp * Hp) * 4
                  + TS * Bp * 4 * Hp * 4 + TS * Bp * Hp * 4 + Bp * Hp * 4)
    vmem_limit = None
    if chunk_vmem > 28 * 1024 * 1024:
        vmem_limit = min(int(chunk_vmem * 1.25), 64 * 1024 * 1024)

    out_shapes = (
        jax.ShapeDtypeStruct((Sp, Bp, Op), jnp.float32),
        jax.ShapeDtypeStruct((1, Bp, Hp), jnp.float32),
    )

    kernel = functools.partial(gru_decoder_kernel, seq_len=S, unroll=unroll_eff,
                               mask_tail=mask_tail)

    out_p, hT_p = pl.pallas_call(
        kernel,
        out_shape=out_shapes,
        grid_spec=pltpu.PrefetchScalarGridSpec(
            num_scalar_prefetch=0,
            grid=(num_chunks,),
            in_specs=[
                pl.BlockSpec((TS, Bp, Ip), lambda c: (c, 0, 0)),      # X chunk
                pl.BlockSpec((1, Bp, Hp), lambda c: (0, 0, 0)),       # h0
                pl.BlockSpec((Ip, 3 * Hp), lambda c: (0, 0)),         # W_ih^T (gate-padded)
                pl.BlockSpec((Hp, 3 * Hp), lambda c: (0, 0)),         # W_hh^T (gate-padded)
                pl.BlockSpec((1, 3 * Hp), lambda c: (0, 0)),          # b_ih
                pl.BlockSpec((1, 3 * Hp), lambda c: (0, 0)),          # b_hh
                pl.BlockSpec((Hp, Op), lambda c: (0, 0)),             # W_lin^T
                pl.BlockSpec((1, Op), lambda c: (0, 0)),              # b_lin
            ],
            out_specs=[
                pl.BlockSpec((TS, Bp, Op), lambda c: (c, 0, 0)),      # outputs chunk (lane-dense)
                pl.BlockSpec((1, Bp, Hp), lambda c: (0, 0, 0)),       # final hidden
            ],
            scratch_shapes=[
                pltpu.VMEM((TS, Bp, 3 * Hp), jnp.float32),            # gi for this chunk
                pltpu.VMEM((TS, Bp, Hp), jnp.float32),                # hidden states, this chunk
                pltpu.VMEM((Bp, Hp), jnp.float32),                    # carried hidden state
            ],
        ),
        compiler_params=pltpu.CompilerParams(
            dimension_semantics=("arbitrary",),                       # sequential carry over chunks
            vmem_limit_bytes=vmem_limit,
        ),
        cost_estimate=pl.CostEstimate(
            flops=flops, transcendentals=transcendentals, bytes_accessed=bytes_accessed),
    )(x_p, h0_p, w_ih_p, w_hh_p, b_ih_p, b_hh_p, w_lin_p, b_lin_p)

    # Slice off sequence / batch / lane padding.
    return out_p[:S, :B, :O], hT_p[:, :B, :H]


def init_params(key, num_input, num_hidden, num_output):
    """Deterministic init mirroring init_seq2seq (xavier_uniform on GRU/Linear weights)
    and PyTorch default uniform(+-1/sqrt(H)) for biases."""
    k1, k2, k3, k4, k5, k6 = jax.random.split(key, 6)
    H, I, O = num_hidden, num_input, num_output

    def xavier(k, shape, fan_in, fan_out):
        bound = np.sqrt(6.0 / (fan_in + fan_out))
        return jax.random.uniform(k, shape, jnp.float32, -bound, bound)

    # GRU weights (PyTorch shapes: weight_ih (3H, I), weight_hh (3H, H)), xavier_uniform.
    w_ih = xavier(k1, (3 * H, I), I, 3 * H)
    w_hh = xavier(k2, (3 * H, H), H, 3 * H)
    bb = 1.0 / np.sqrt(H)
    b_ih = jax.random.uniform(k3, (3 * H,), jnp.float32, -bb, bb)
    b_hh = jax.random.uniform(k4, (3 * H,), jnp.float32, -bb, bb)

    # Linear (O, H), xavier_uniform; bias default uniform.
    w_lin = xavier(k5, (O, H), H, O)
    b_lin = jax.random.uniform(k6, (O,), jnp.float32, -bb, bb)

    return {
        "w_ih_t": w_ih.T,                 # (I, 3H)
        "w_hh_t": w_hh.T,                 # (H, 3H)
        "b_ih": b_ih.reshape(1, 3 * H),
        "b_hh": b_hh.reshape(1, 3 * H),
        "w_lin_t": w_lin.T,               # (H, O)
        "b_lin": b_lin.reshape(1, O),
    }


def reference_forward(x, h0, params):
    """Pure-JAX reference (lax.scan) for correctness checking."""
    H = params["w_hh_t"].shape[0]

    def step(h, x_t):
        gi = x_t @ params["w_ih_t"] + params["b_ih"]
        gh = h @ params["w_hh_t"] + params["b_hh"]
        r = jax.nn.sigmoid(gi[:, :H] + gh[:, :H])
        z = jax.nn.sigmoid(gi[:, H:2 * H] + gh[:, H:2 * H])
        n = jnp.tanh(gi[:, 2 * H:] + r * gh[:, 2 * H:])
        h_new = (1.0 - z) * n + z * h
        y = h_new @ params["w_lin_t"] + params["b_lin"]
        return h_new, y

    h_last, ys = lax.scan(step, h0[0], x)
    return ys, h_last[None]


if __name__ == "__main__":
    SEQ, BATCH = 8, 2
    NUM_INPUT, NUM_HIDDEN, NUM_OUTPUT = 16, 32, 8

    key = jax.random.PRNGKey(0)
    kx, kh, kp = jax.random.split(key, 3)

    x = jax.random.normal(kx, (SEQ, BATCH, NUM_INPUT), jnp.float32)
    h0 = jax.random.normal(kh, (1, BATCH, NUM_HIDDEN), jnp.float32)
    params = init_params(kp, NUM_INPUT, NUM_HIDDEN, NUM_OUTPUT)

    ref_out, ref_hidden = reference_forward(x, h0, params)

    # (a) f32 weights, multi-chunk grid (TS=3 -> Sp=9): exercises the carried hidden state
    #     across grid steps and the padded-timestep mask. Tight tolerance.
    outputs, hidden = rnn_decoder_forward(x, h0, params, chunk_timesteps=3,
                                          use_bf16_weights=False)
    outputs, hidden = jax.block_until_ready((outputs, hidden))
    np.testing.assert_allclose(np.asarray(outputs), np.asarray(ref_out), rtol=1e-5, atol=1e-5)
    np.testing.assert_allclose(np.asarray(hidden), np.asarray(ref_hidden), rtol=1e-5, atol=1e-5)

    # (b) bf16 weights (MXU fast path on v5e/v6e/v7x), default chunking. Looser tolerance.
    outputs_bf, hidden_bf = rnn_decoder_forward(x, h0, params, use_bf16_weights=True)
    outputs_bf, hidden_bf = jax.block_until_ready((outputs_bf, hidden_bf))
    np.testing.assert_allclose(np.asarray(outputs_bf), np.asarray(ref_out), rtol=5e-2, atol=5e-2)
    np.testing.assert_allclose(np.asarray(hidden_bf), np.asarray(ref_hidden), rtol=5e-2, atol=5e-2)

    assert outputs.shape == (SEQ, BATCH, NUM_OUTPUT)
    assert hidden.shape == (1, BATCH, NUM_HIDDEN)
    print("KERNEL_OK")
</pallas_src>

<mosaic_0001>
module attributes {stable_mosaic.version = 11 : i64} {
  func.func @gru_decoder_kernel(%arg0: i32, %arg1: memref<3x8x128xf32, #tpu.memory_space<vmem>>, %arg2: memref<1x8x128xf32, #tpu.memory_space<vmem>>, %arg3: memref<128x384xf32, #tpu.memory_space<vmem>>, %arg4: memref<128x384xf32, #tpu.memory_space<vmem>>, %arg5: memref<1x384xf32, #tpu.memory_space<vmem>>, %arg6: memref<1x384xf32, #tpu.memory_space<vmem>>, %arg7: memref<128x128xf32, #tpu.memory_space<vmem>>, %arg8: memref<1x128xf32, #tpu.memory_space<vmem>>, %arg9: memref<3x8x128xf32, #tpu.memory_space<vmem>>, %arg10: memref<1x8x128xf32, #tpu.memory_space<vmem>>, %arg11: memref<3x8x384xf32, #tpu.memory_space<vmem>>, %arg12: memref<3x8x128xf32, #tpu.memory_space<vmem>>, %arg13: memref<8x128xf32, #tpu.memory_space<vmem>>) attributes {dimension_semantics = [#tpu.dimension_semantics<arbitrary>], iteration_bounds = array<i64: 3>, scalar_prefetch = 0 : i64, scratch_operands = 3 : i64, tpu.core_type = #tpu.core_type<tc>, window_params = [{transform_indices = @transform_0, window_bounds = array<i64: 3, 8, 128>}, {pipeline_mode = #tpu.pipeline_mode<synchronous>, transform_indices = @transform_1, window_bounds = array<i64: 1, 8, 128>}, {pipeline_mode = #tpu.pipeline_mode<synchronous>, transform_indices = @transform_2, window_bounds = array<i64: 128, 384>}, {pipeline_mode = #tpu.pipeline_mode<synchronous>, transform_indices = @transform_3, window_bounds = array<i64: 128, 384>}, {pipeline_mode = #tpu.pipeline_mode<synchronous>, transform_indices = @transform_4, window_bounds = array<i64: 1, 384>}, {pipeline_mode = #tpu.pipeline_mode<synchronous>, transform_indices = @transform_5, window_bounds = array<i64: 1, 384>}, {pipeline_mode = #tpu.pipeline_mode<synchronous>, transform_indices = @transform_6, window_bounds = array<i64: 128, 128>}, {pipeline_mode = #tpu.pipeline_mode<synchronous>, transform_indices = @transform_7, window_bounds = array<i64: 1, 128>}, {transform_indices = @transform_8, window_bounds = array<i64: 3, 8, 128>}, {pipeline_mode = #tpu.pipeline_mode<synchronous>, transform_indices = @transform_9, window_bounds = array<i64: 1, 8, 128>}]} {
    %c0_i32 = arith.constant 0 : i32
    %0 = arith.cmpi eq, %arg0, %c0_i32 : i32
    %1 = arith.extui %0 : i1 to i32
    %c0_i32_0 = arith.constant 0 : i32
    %2 = arith.cmpi ne, %1, %c0_i32_0 : i32
    scf.if %2 {
      %c0_75 = arith.constant 0 : index
      %c0_76 = arith.constant 0 : index
      %c0_77 = arith.constant 0 : index
      %179 = vector.load %arg2[%c0_75, %c0_76, %c0_77] : memref<1x8x128xf32, #tpu.memory_space<vmem>>, vector<1x8x128xf32>
      %180 = vector.shape_cast %179 : vector<1x8x128xf32> to vector<8x128xf32>
      %c0_78 = arith.constant 0 : index
      %c0_79 = arith.constant 0 : index
      %181 = vector.load %arg13[%c0_78, %c0_79] : memref<8x128xf32, #tpu.memory_space<vmem>>, vector<8x128xf32>
      tpu.vector_store %arg13[%c0_78, %c0_79], %180 {strides = array<i32>} : memref<8x128xf32, #tpu.memory_space<vmem>>, vector<8x128xf32>,
    } else {
    }
    %c0 = arith.constant 0 : index
    %c0_1 = arith.constant 0 : index
    %c0_2 = arith.constant 0 : index
    %3 = vector.load %arg1[%c0, %c0_1, %c0_2] : memref<3x8x128xf32, #tpu.memory_space<vmem>>, vector<3x8x128xf32>
    %4 = vector.shape_cast %3 : vector<3x8x128xf32> to vector<24x128xf32>
    %c0_3 = arith.constant 0 : index
    %c0_4 = arith.constant 0 : index
    %5 = vector.load %arg3[%c0_3, %c0_4] : memref<128x384xf32, #tpu.memory_space<vmem>>, vector<128x384xf32>
    %cst = arith.constant dense<0.000000e+00> : vector<24x384xf32>
    %6 = tpu.matmul %4, %5, %cst {dimension_numbers = #tpu.dot_dimension_numbers<[1], [0], [0], [1], [0, 0, 1, 1], [], []>} : vector<24x128xf32>, vector<128x384xf32>, vector<24x384xf32> -> vector<24x384xf32>
    %c0_5 = arith.constant 0 : index
    %c0_6 = arith.constant 0 : index
    %7 = vector.load %arg5[%c0_5, %c0_6] : memref<1x384xf32, #tpu.memory_space<vmem>>, vector<1x384xf32>
    %8 = vector.broadcast %7 : vector<1x384xf32> to vector<24x384xf32>
    %9 = arith.addf %6, %8 : vector<24x384xf32>
    %10 = vector.shape_cast %9 : vector<24x384xf32> to vector<3x8x384xf32>
    %c0_7 = arith.constant 0 : index
    %c0_8 = arith.constant 0 : index
    %c0_9 = arith.constant 0 : index
    %11 = vector.load %arg11[%c0_7, %c0_8, %c0_9] : memref<3x8x384xf32, #tpu.memory_space<vmem>>, vector<3x8x384xf32>
    tpu.vector_store %arg11[%c0_7, %c0_8, %c0_9], %10 {strides = array<i32>} : memref<3x8x384xf32, #tpu.memory_space<vmem>>, vector<3x8x384xf32>,
    %c0_10 = arith.constant 0 : index
    %c0_11 = arith.constant 0 : index
    %12 = vector.load %arg4[%c0_10, %c0_11] : memref<128x384xf32, #tpu.memory_space<vmem>>, vector<128x384xf32>
    %c0_12 = arith.constant 0 : index
    %c0_13 = arith.constant 0 : index
    %13 = vector.load %arg6[%c0_12, %c0_13] : memref<1x384xf32, #tpu.memory_space<vmem>>, vector<1x384xf32>
    %c3_i32 = arith.constant 3 : i32
    %14 = arith.muli %arg0, %c3_i32 : i32
    %c0_14 = arith.constant 0 : index
    %c0_15 = arith.constant 0 : index
    %15 = vector.load %arg13[%c0_14, %c0_15] : memref<8x128xf32, #tpu.memory_space<vmem>>, vector<8x128xf32>
    %c0_i32_16 = arith.constant 0 : i32
    %16 = arith.index_cast %c0_i32_16 : i32 to index
    %c0_17 = arith.constant 0 : index
    %c0_18 = arith.constant 0 : index
    %17 = vector.load %arg11[%16, %c0_17, %c0_18] : memref<3x8x384xf32, #tpu.memory_space<vmem>>, vector<1x8x384xf32>
    %18 = vector.shape_cast %17 : vector<1x8x384xf32> to vector<8x384xf32>
    %cst_19 = arith.constant dense<0.000000e+00> : vector<8x384xf32>
    %19 = tpu.matmul %15, %12, %cst_19 {dimension_numbers = #tpu.dot_dimension_numbers<[1], [0], [0], [1], [0, 0, 1, 1], [], []>} : vector<8x128xf32>, vector<128x384xf32>, vector<8x384xf32> -> vector<8x384xf32>
    %20 = vector.broadcast %13 : vector<1x384xf32> to vector<8x384xf32>
    %21 = arith.addf %19, %20 : vector<8x384xf32>
    %22 = vector.extract_strided_slice %18 {offsets = [0, 0], sizes = [8, 128], strides = [1, 1]} : vector<8x384xf32> to vector<8x128xf32>
    %23 = vector.extract_strided_slice %21 {offsets = [0, 0], sizes = [8, 128], strides = [1, 1]} : vector<8x384xf32> to vector<8x128xf32>
    %24 = arith.addf %22, %23 : vector<8x128xf32>
    %cst_20 = arith.constant 5.000000e-01 : f32
    %25 = vector.broadcast %cst_20 : f32 to vector<8x128xf32>
    %26 = arith.mulf %25, %24 : vector<8x128xf32>
    %27 = math.tanh %26 : vector<8x128xf32>
    %cst_21 = arith.constant 1.000000e+00 : f32
    %28 = vector.broadcast %cst_21 : f32 to vector<8x128xf32>
    %29 = arith.addf %27, %28 : vector<8x128xf32>
    %cst_22 = arith.constant 5.000000e-01 : f32
    %30 = vector.broadcast %cst_22 : f32 to vector<8x128xf32>
    %31 = arith.mulf %30, %29 : vector<8x128xf32>
    %32 = vector.extract_strided_slice %18 {offsets = [0, 128], sizes = [8, 128], strides = [1, 1]} : vector<8x384xf32> to vector<8x128xf32>
    %33 = vector.extract_strided_slice %21 {offsets = [0, 128], sizes = [8, 128], strides = [1, 1]} : vector<8x384xf32> to vector<8x128xf32>
    %34 = arith.addf %32, %33 : vector<8x128xf32>
    %cst_23 = arith.constant 5.000000e-01 : f32
    %35 = vector.broadcast %cst_23 : f32 to vector<8x128xf32>
    %36 = arith.mulf %35, %34 : vector<8x128xf32>
    %37 = math.tanh %36 : vector<8x128xf32>
    %cst_24 = arith.constant 1.000000e+00 : f32
    %38 = vector.broadcast %cst_24 : f32 to vector<8x128xf32>
    %39 = arith.addf %37, %38 : vector<8x128xf32>
    %cst_25 = arith.constant 5.000000e-01 : f32
    %40 = vector.broadcast %cst_25 : f32 to vector<8x128xf32>
    %41 = arith.mulf %40, %39 : vector<8x128xf32>
    %42 = vector.extract_strided_slice %18 {offsets = [0, 256], sizes = [8, 128], strides = [1, 1]} : vector<8x384xf32> to vector<8x128xf32>
    %43 = vector.extract_strided_slice %21 {offsets = [0, 256], sizes = [8, 128], strides = [1, 1]} : vector<8x384xf32> to vector<8x128xf32>
    %44 = arith.mulf %31, %43 : vector<8x128xf32>
    %45 = arith.addf %42, %44 : vector<8x128xf32>
    %46 = math.tanh %45 : vector<8x128xf32>
    %cst_26 = arith.constant 1.000000e+00 : f32
    %47 = vector.broadcast %cst_26 : f32 to vector<8x128xf32>
    %48 = arith.subf %47, %41 : vector<8x128xf32>
    %49 = arith.mulf %48, %46 : vector<8x128xf32>
    %50 = arith.mulf %41, %15 : vector<8x128xf32>
    %51 = arith.addf %49, %50 : vector<8x128xf32>
    %52 = arith.addi %14, %c0_i32_16 : i32
    %c8_i32 = arith.constant 8 : i32
    %53 = arith.cmpi slt, %52, %c8_i32 : i32
    %54 = arith.extui %53 : i1 to i32
    %55 = arith.sitofp %54 : i32 to f32
    %56 = vector.broadcast %55 : f32 to vector<8x128xf32>
    %57 = arith.mulf %56, %51 : vector<8x128xf32>
    %cst_27 = arith.constant 1.000000e+00 : f32
    %58 = arith.subf %cst_27, %55 : f32
    %59 = vector.broadcast %58 : f32 to vector<8x128xf32>
    %60 = arith.mulf %59, %15 : vector<8x128xf32>
    %61 = arith.addf %57, %60 : vector<8x128xf32>
    %62 = arith.index_cast %c0_i32_16 : i32 to index
    %c0_28 = arith.constant 0 : index
    %c0_29 = arith.constant 0 : index
    %63 = vector.load %arg12[%62, %c0_28, %c0_29] : memref<3x8x128xf32, #tpu.memory_space<vmem>>, vector<1x8x128xf32>
    %64 = vector.shape_cast %63 : vector<1x8x128xf32> to vector<8x128xf32>
    %65 = vector.shape_cast %61 : vector<8x128xf32> to vector<1x8x128xf32>
    tpu.vector_store %arg12[%62, %c0_28, %c0_29], %65 {strides = array<i32>} : memref<3x8x128xf32, #tpu.memory_space<vmem>>, vector<1x8x128xf32>,
    %c1_i32 = arith.constant 1 : i32
    %66 = arith.index_cast %c1_i32 : i32 to index
    %c0_30 = arith.constant 0 : index
    %c0_31 = arith.constant 0 : index
    %67 = vector.load %arg11[%66, %c0_30, %c0_31] : memref<3x8x384xf32, #tpu.memory_space<vmem>>, vector<1x8x384xf32>
    %68 = vector.shape_cast %67 : vector<1x8x384xf32> to vector<8x384xf32>
    %cst_32 = arith.constant dense<0.000000e+00> : vector<8x384xf32>
    %69 = tpu.matmul %61, %12, %cst_32 {dimension_numbers = #tpu.dot_dimension_numbers<[1], [0], [0], [1], [0, 0, 1, 1], [], []>} : vector<8x128xf32>, vector<128x384xf32>, vector<8x384xf32> -> vector<8x384xf32>
    %70 = vector.broadcast %13 : vector<1x384xf32> to vector<8x384xf32>
    %71 = arith.addf %69, %70 : vector<8x384xf32>
    %72 = vector.extract_strided_slice %68 {offsets = [0, 0], sizes = [8, 128], strides = [1, 1]} : vector<8x384xf32> to vector<8x128xf32>
    %73 = vector.extract_strided_slice %71 {offsets = [0, 0], sizes = [8, 128], strides = [1, 1]} : vector<8x384xf32> to vector<8x128xf32>
    %74 = arith.addf %72, %73 : vector<8x128xf32>
    %cst_33 = arith.constant 5.000000e-01 : f32
    %75 = vector.broadcast %cst_33 : f32 to vector<8x128xf32>
    %76 = arith.mulf %75, %74 : vector<8x128xf32>
    %77 = math.tanh %76 : vector<8x128xf32>
    %cst_34 = arith.constant 1.000000e+00 : f32
    %78 = vector.broadcast %cst_34 : f32 to vector<8x128xf32>
    %79 = arith.addf %77, %78 : vector<8x128xf32>
    %cst_35 = arith.constant 5.000000e-01 : f32
    %80 = vector.broadcast %cst_35 : f32 to vector<8x128xf32>
    %81 = arith.mulf %80, %79 : vector<8x128xf32>
    %82 = vector.extract_strided_slice %68 {offsets = [0, 128], sizes = [8, 128], strides = [1, 1]} : vector<8x384xf32> to vector<8x128xf32>
    %83 = vector.extract_strided_slice %71 {offsets = [0, 128], sizes = [8, 128], strides = [1, 1]} : vector<8x384xf32> to vector<8x128xf32>
    %84 = arith.addf %82, %83 : vector<8x128xf32>
    %cst_36 = arith.constant 5.000000e-01 : f32
    %85 = vector.broadcast %cst_36 : f32 to vector<8x128xf32>
    %86 = arith.mulf %85, %84 : vector<8x128xf32>
    %87 = math.tanh %86 : vector<8x128xf32>
    %cst_37 = arith.constant 1.000000e+00 : f32
    %88 = vector.broadcast %cst_37 : f32 to vector<8x128xf32>
    %89 = arith.addf %87, %88 : vector<8x128xf32>
    %cst_38 = arith.constant 5.000000e-01 : f32
    %90 = vector.broadcast %cst_38 : f32 to vector<8x128xf32>
    %91 = arith.mulf %90, %89 : vector<8x128xf32>
    %92 = vector.extract_strided_slice %68 {offsets = [0, 256], sizes = [8, 128], strides = [1, 1]} : vector<8x384xf32> to vector<8x128xf32>
    %93 = vector.extract_strided_slice %71 {offsets = [0, 256], sizes = [8, 128], strides = [1, 1]} : vector<8x384xf32> to vector<8x128xf32>
    %94 = arith.mulf %81, %93 : vector<8x128xf32>
    %95 = arith.addf %92, %94 : vector<8x128xf32>
    %96 = math.tanh %95 : vector<8x128xf32>
    %cst_39 = arith.constant 1.000000e+00 : f32
    %97 = vector.broadcast %cst_39 : f32 to vector<8x128xf32>
    %98 = arith.subf %97, %91 : vector<8x128xf32>
    %99 = arith.mulf %98, %96 : vector<8x128xf32>
    %100 = arith.mulf %91, %61 : vector<8x128xf32>
    %101 = arith.addf %99, %100 : vector<8x128xf32>
    %102 = arith.addi %14, %c1_i32 : i32
    %c8_i32_40 = arith.constant 8 : i32
    %103 = arith.cmpi slt, %102, %c8_i32_40 : i32
    %104 = arith.extui %103 : i1 to i32
    %105 = arith.sitofp %104 : i32 to f32
    %106 = vector.broadcast %105 : f32 to vector<8x128xf32>
    %107 = arith.mulf %106, %101 : vector<8x128xf32>
    %cst_41 = arith.constant 1.000000e+00 : f32
    %108 = arith.subf %cst_41, %105 : f32
    %109 = vector.broadcast %108 : f32 to vector<8x128xf32>
    %110 = arith.mulf %109, %61 : vector<8x128xf32>
    %111 = arith.addf %107, %110 : vector<8x128xf32>
    %112 = arith.index_cast %c1_i32 : i32 to index
    %c0_42 = arith.constant 0 : index
    %c0_43 = arith.constant 0 : index
    %113 = vector.load %arg12[%112, %c0_42, %c0_43] : memref<3x8x128xf32, #tpu.memory_space<vmem>>, vector<1x8x128xf32>
    %114 = vector.shape_cast %113 : vector<1x8x128xf32> to vector<8x128xf32>
    %115 = vector.shape_cast %111 : vector<8x128xf32> to vector<1x8x128xf32>
    tpu.vector_store %arg12[%112, %c0_42, %c0_43], %115 {strides = array<i32>} : memref<3x8x128xf32, #tpu.memory_space<vmem>>, vector<1x8x128xf32>,
    %c2_i32 = arith.constant 2 : i32
    %116 = arith.index_cast %c2_i32 : i32 to index
    %c0_44 = arith.constant 0 : index
    %c0_45 = arith.constant 0 : index
    %117 = vector.load %arg11[%116, %c0_44, %c0_45] : memref<3x8x384xf32, #tpu.memory_space<vmem>>, vector<1x8x384xf32>
    %118 = vector.shape_cast %117 : vector<1x8x384xf32> to vector<8x384xf32>
    %cst_46 = arith.constant dense<0.000000e+00> : vector<8x384xf32>
    %119 = tpu.matmul %111, %12, %cst_46 {dimension_numbers = #tpu.dot_dimension_numbers<[1], [0], [0], [1], [0, 0, 1, 1], [], []>} : vector<8x128xf32>, vector<128x384xf32>, vector<8x384xf32> -> vector<8x384xf32>
    %120 = vector.broadcast %13 : vector<1x384xf32> to vector<8x384xf32>
    %121 = arith.addf %119, %120 : vector<8x384xf32>
    %122 = vector.extract_strided_slice %118 {offsets = [0, 0], sizes = [8, 128], strides = [1, 1]} : vector<8x384xf32> to vector<8x128xf32>
    %123 = vector.extract_strided_slice %121 {offsets = [0, 0], sizes = [8, 128], strides = [1, 1]} : vector<8x384xf32> to vector<8x128xf32>
    %124 = arith.addf %122, %123 : vector<8x128xf32>
    %cst_47 = arith.constant 5.000000e-01 : f32
    %125 = vector.broadcast %cst_47 : f32 to vector<8x128xf32>
    %126 = arith.mulf %125, %124 : vector<8x128xf32>
    %127 = math.tanh %126 : vector<8x128xf32>
    %cst_48 = arith.constant 1.000000e+00 : f32
    %128 = vector.broadcast %cst_48 : f32 to vector<8x128xf32>
    %129 = arith.addf %127, %128 : vector<8x128xf32>
    %cst_49 = arith.constant 5.000000e-01 : f32
    %130 = vector.broadcast %cst_49 : f32 to vector<8x128xf32>
    %131 = arith.mulf %130, %129 : vector<8x128xf32>
    %132 = vector.extract_strided_slice %118 {offsets = [0, 128], sizes = [8, 128], strides = [1, 1]} : vector<8x384xf32> to vector<8x128xf32>
    %133 = vector.extract_strided_slice %121 {offsets = [0, 128], sizes = [8, 128], strides = [1, 1]} : vector<8x384xf32> to vector<8x128xf32>
    %134 = arith.addf %132, %133 : vector<8x128xf32>
    %cst_50 = arith.constant 5.000000e-01 : f32
    %135 = vector.broadcast %cst_50 : f32 to vector<8x128xf32>
    %136 = arith.mulf %135, %134 : vector<8x128xf32>
    %137 = math.tanh %136 : vector<8x128xf32>
    %cst_51 = arith.constant 1.000000e+00 : f32
    %138 = vector.broadcast %cst_51 : f32 to vector<8x128xf32>
    %139 = arith.addf %137, %138 : vector<8x128xf32>
    %cst_52 = arith.constant 5.000000e-01 : f32
    %140 = vector.broadcast %cst_52 : f32 to vector<8x128xf32>
    %141 = arith.mulf %140, %139 : vector<8x128xf32>
    %142 = vector.extract_strided_slice %118 {offsets = [0, 256], sizes = [8, 128], strides = [1, 1]} : vector<8x384xf32> to vector<8x128xf32>
    %143 = vector.extract_strided_slice %121 {offsets = [0, 256], sizes = [8, 128], strides = [1, 1]} : vector<8x384xf32> to vector<8x128xf32>
    %144 = arith.mulf %131, %143 : vector<8x128xf32>
    %145 = arith.addf %142, %144 : vector<8x128xf32>
    %146 = math.tanh %145 : vector<8x128xf32>
    %cst_53 = arith.constant 1.000000e+00 : f32
    %147 = vector.broadcast %cst_53 : f32 to vector<8x128xf32>
    %148 = arith.subf %147, %141 : vector<8x128xf32>
    %149 = arith.mulf %148, %146 : vector<8x128xf32>
    %150 = arith.mulf %141, %111 : vector<8x128xf32>
    %151 = arith.addf %149, %150 : vector<8x128xf32>
    %152 = arith.addi %14, %c2_i32 : i32
    %c8_i32_54 = arith.constant 8 : i32
    %153 = arith.cmpi slt, %152, %c8_i32_54 : i32
    %154 = arith.extui %153 : i1 to i32
    %155 = arith.sitofp %154 : i32 to f32
    %156 = vector.broadcast %155 : f32 to vector<8x128xf32>
    %157 = arith.mulf %156, %151 : vector<8x128xf32>
    %cst_55 = arith.constant 1.000000e+00 : f32
    %158 = arith.subf %cst_55, %155 : f32
    %159 = vector.broadcast %158 : f32 to vector<8x128xf32>
    %160 = arith.mulf %159, %111 : vector<8x128xf32>
    %161 = arith.addf %157, %160 : vector<8x128xf32>
    %162 = arith.index_cast %c2_i32 : i32 to index
    %c0_56 = arith.constant 0 : index
    %c0_57 = arith.constant 0 : index
    %163 = vector.load %arg12[%162, %c0_56, %c0_57] : memref<3x8x128xf32, #tpu.memory_space<vmem>>, vector<1x8x128xf32>
    %164 = vector.shape_cast %163 : vector<1x8x128xf32> to vector<8x128xf32>
    %165 = vector.shape_cast %161 : vector<8x128xf32> to vector<1x8x128xf32>
    tpu.vector_store %arg12[%162, %c0_56, %c0_57], %165 {strides = array<i32>} : memref<3x8x128xf32, #tpu.memory_space<vmem>>, vector<1x8x128xf32>,
    %c3_i32_58 = arith.constant 3 : i32
    %c0_59 = arith.constant 0 : index
    %c0_60 = arith.constant 0 : index
    %166 = vector.load %arg13[%c0_59, %c0_60] : memref<8x128xf32, #tpu.memory_space<vmem>>, vector<8x128xf32>
    tpu.vector_store %arg13[%c0_59, %c0_60], %161 {strides = array<i32>} : memref<8x128xf32, #tpu.memory_space<vmem>>, vector<8x128xf32>,
    %c0_61 = arith.constant 0 : index
    %c0_62 = arith.constant 0 : index
    %c0_63 = arith.constant 0 : index
    %167 = vector.load %arg12[%c0_61, %c0_62, %c0_63] : memref<3x8x128xf32, #tpu.memory_space<vmem>>, vector<3x8x128xf32>
    %168 = vector.shape_cast %167 : vector<3x8x128xf32> to vector<24x128xf32>
    %c0_64 = arith.constant 0 : index
    %c0_65 = arith.constant 0 : index
    %169 = vector.load %arg7[%c0_64, %c0_65] : memref<128x128xf32, #tpu.memory_space<vmem>>, vector<128x128xf32>
    %cst_66 = arith.constant dense<0.000000e+00> : vector<24x128xf32>
    %170 = tpu.matmul %168, %169, %cst_66 {dimension_numbers = #tpu.dot_dimension_numbers<[1], [0], [0], [1], [0, 0, 1, 1], [], []>} : vector<24x128xf32>, vector<128x128xf32>, vector<24x128xf32> -> vector<24x128xf32>
    %c0_67 = arith.constant 0 : index
    %c0_68 = arith.constant 0 : index
    %171 = vector.load %arg8[%c0_67, %c0_68] : memref<1x128xf32, #tpu.memory_space<vmem>>, vector<1x128xf32>
    %172 = vector.broadcast %171 : vector<1x128xf32> to vector<24x128xf32>
    %173 = arith.addf %170, %172 : vector<24x128xf32>
    %174 = vector.shape_cast %173 : vector<24x128xf32> to vector<3x8x128xf32>
    %c0_69 = arith.constant 0 : index
    %c0_70 = arith.constant 0 : index
    %c0_71 = arith.constant 0 : index
    %175 = vector.load %arg9[%c0_69, %c0_70, %c0_71] : memref<3x8x128xf32, #tpu.memory_space<vmem>>, vector<3x8x128xf32>
    tpu.vector_store %arg9[%c0_69, %c0_70, %c0_71], %174 {strides = array<i32>} : memref<3x8x128xf32, #tpu.memory_space<vmem>>, vector<3x8x128xf32>,
    %c0_72 = arith.constant 0 : index
    %c0_73 = arith.constant 0 : index
    %c0_74 = arith.constant 0 : index
    %176 = vector.load %arg10[%c0_72, %c0_73, %c0_74] : memref<1x8x128xf32, #tpu.memory_space<vmem>>, vector<1x8x128xf32>
    %177 = vector.shape_cast %176 : vector<1x8x128xf32> to vector<8x128xf32>
    %178 = vector.shape_cast %161 : vector<8x128xf32> to vector<1x8x128xf32>
    tpu.vector_store %arg10[%c0_72, %c0_73, %c0_74], %178 {strides = array<i32>} : memref<1x8x128xf32, #tpu.memory_space<vmem>>, vector<1x8x128xf32>,
    return
  }
  func.func @transform_0(%arg0: i32) -> (i32, i32, i32) {
    %c0_i32 = arith.constant 0 : i32
    %c0_i32_0 = arith.constant 0 : i32
    %c0_i32_1 = arith.constant 0 : i32
    return %arg0, %c0_i32, %c0_i32_0 : i32, i32, i32
  }
  func.func @transform_1(%arg0: i32) -> (i32, i32, i32) {
    %c0_i32 = arith.constant 0 : i32
    %c0_i32_0 = arith.constant 0 : i32
    %c0_i32_1 = arith.constant 0 : i32
    %c0_i32_2 = arith.constant 0 : i32
    return %c0_i32, %c0_i32_0, %c0_i32_1 : i32, i32, i32
  }
  func.func @transform_2(%arg0: i32) -> (i32, i32) {
    %c0_i32 = arith.constant 0 : i32
    %c0_i32_0 = arith.constant 0 : i32
    %c0_i32_1 = arith.constant 0 : i32
    return %c0_i32, %c0_i32_0 : i32, i32
  }
  func.func @transform_3(%arg0: i32) -> (i32, i32) {
    %c0_i32 = arith.constant 0 : i32
    %c0_i32_0 = arith.constant 0 : i32
    %c0_i32_1 = arith.constant 0 : i32
    return %c0_i32, %c0_i32_0 : i32, i32
  }
  func.func @transform_4(%arg0: i32) -> (i32, i32) {
    %c0_i32 = arith.constant 0 : i32
    %c0_i32_0 = arith.constant 0 : i32
    %c0_i32_1 = arith.constant 0 : i32
    return %c0_i32, %c0_i32_0 : i32, i32
  }
  func.func @transform_5(%arg0: i32) -> (i32, i32) {
    %c0_i32 = arith.constant 0 : i32
    %c0_i32_0 = arith.constant 0 : i32
    %c0_i32_1 = arith.constant 0 : i32
    return %c0_i32, %c0_i32_0 : i32, i32
  }
  func.func @transform_6(%arg0: i32) -> (i32, i32) {
    %c0_i32 = arith.constant 0 : i32
    %c0_i32_0 = arith.constant 0 : i32
    %c0_i32_1 = arith.constant 0 : i32
    return %c0_i32, %c0_i32_0 : i32, i32
  }
  func.func @transform_7(%arg0: i32) -> (i32, i32) {
    %c0_i32 = arith.constant 0 : i32
    %c0_i32_0 = arith.constant 0 : i32
    %c0_i32_1 = arith.constant 0 : i32
    return %c0_i32, %c0_i32_0 : i32, i32
  }
  func.func @transform_8(%arg0: i32) -> (i32, i32, i32) {
    %c0_i32 = arith.constant 0 : i32
    %c0_i32_0 = arith.constant 0 : i32
    %c0_i32_1 = arith.constant 0 : i32
    return %arg0, %c0_i32, %c0_i32_0 : i32, i32, i32
  }
  func.func @transform_9(%arg0: i32) -> (i32, i32, i32) {
    %c0_i32 = arith.constant 0 : i32
    %c0_i32_0 = arith.constant 0 : i32
    %c0_i32_1 = arith.constant 0 : i32
    %c0_i32_2 = arith.constant 0 : i32
    return %c0_i32, %c0_i32_0, %c0_i32_1 : i32, i32, i32
  }
}

</mosaic_0001>

<bundles_post_ra>
// kernel: tpu_custom_call.1
= control target key start
LH: loop header
LB: loop body
LE: loop exit
PB: predicated region body
PF: predicated region fallthrough
CT: control target
= control target key end

     0   :  { %s2140_s0 = inlined_call_operand.hbm [shape: f32[9,8,128], index: 0, kind: input, shape index: {}]   ;;  %s2141_s1 = inlined_call_operand.hbm [shape: f32[1,8,128], index: 1, kind: input, shape index: {}]   ;;  %s2142_s2 = inlined_call_operand.hbm [shape: f32[128,384], index: 2, kind: input, shape index: {}]   ;;  %s2143_s3 = inlined_call_operand.hbm [shape: f32[128,384], index: 3, kind: input, shape index: {}]   ;;  %s2144_s4 = inlined_call_operand.vmem [shape: f32[1,384], index: 4, kind: input, shape index: {}]   ;;  %s2145_s5 = inlined_call_operand.hbm [shape: f32[1,384], index: 5, kind: input, shape index: {}]   ;;  %s2146_s6 = inlined_call_operand.hbm [shape: f32[128,128], index: 6, kind: input, shape index: {}]   ;;  %s2147_s7 = inlined_call_operand.vmem [shape: f32[1,128], index: 7, kind: input, shape index: {}]   ;;  %s2148_s8 = inlined_call_operand.hbm [shape: f32[9,8,128], index: 8, kind: output, shape index: {0}]   ;;  %s2149_s9 = inlined_call_operand.hbm [shape: f32[1,8,128], index: 9, kind: output, shape index: {1}]  }
   0x1   :  { %2153 = sst [smem:[#allocation26_spill]] %s2141_s1 }
   0x2   :  { %2154 = sst [smem:[#allocation27_spill]] %s2142_s2 }
   0x3   :  { %2155 = sst [smem:[#allocation28_spill]] %s2143_s3 }
   0x4   :  { %2156 = sst [smem:[#allocation29_spill]] %s2145_s5 }
   0x5   :  { %2157 = sst [smem:[#allocation30_spill]] %s2146_s6 }
   0x6   :  { %15 = vsyncpa [#allocation6], 0 }
   0x7   :  { %17 = vsyncpa [#allocation6 + $0x1], 0 }
   0x8   :  { %18 = vsyncpa [#allocation9], 0 }
   0x9   :  { %19 = vsyncpa [#allocation12], 0 }
   0xa   :  { %20 = vsyncpa [#allocation15], 0 }
   0xb   :  { %21 = vsyncpa [#allocation7], 0 }
   0xc   :  { %23 = vsyncpa [#allocation7 + $0x1], 0 }
   0xd   :  { %24 = vsyncpa [#allocation18], 0  ;;  %s1642_s30 = smov 0   ;;  %s1644_s10 = smov 0  }
   0xe   :  { %s1646_s11 = smov 0   ;;  %s1648_s12 = smov 0  }
   0xf LB: > { %s2158_s1 = sld [smem:[#allocation26_spill]]  ;;  %s1666_s16 = sadd.s32 4294967295, %s1578_s12   ;;  %s1578_s12 = sphi %s1648_s12, %s2180_s12   ;;  %s1574_s11 = sphi %s1646_s11, %s2179_s11   ;;  %s1570_s10 = sphi %s1644_s10, %s2178_s10   ;;  %s1566_s30 = sphi %s1642_s30, %s2177_s30  }
  0x10   : > { %p1135_p0 = scmp.ge.s32.totalorder %s1578_s12, 1  ;;  %p51_p1 = scmp.eq.s32.totalorder %s1666_s16, 0 }
  0x11   : > { %p255_p2 = scmp.lt.s32.totalorder %s1578_s12, 4  ;;  %s1580_s18 = smov [#allocation8]  }
  0x12   : > { %s269_s19 = sshll.u32 %s1580_s18, 4  ;;  %s2160_s3 = sld [smem:[#allocation28_spill]]  ;;  %s270_s19 = int_to_ptr.vmem [resolvable:$true] %s269_s19 }
  0x13   : > { %p1672_p4 = pnand %p1135_p0, %p255_p2  ;;  %s2162_s2 = sld [smem:[#allocation27_spill]] }
  0x14   : > { %s1581_s27 = smov [#allocation11]   ;;  %s1582_s29 = smov 384  }
  0x15   : > { %s267_s15 = sshll.u32 %s2158_s1, 4  ;;  %p1187_p5 = pneg %p1672_p4  ;;  %s268_s15 = int_to_ptr.hbm [resolvable:$true] %s267_s15 }
  0x16   : > { %s294_s28 = sshll.u32 %s1581_s27, 4  ;;  %s1583_s13 = smov 24   ;;  %s295_s28 = int_to_ptr.vmem [resolvable:$true] %s294_s28 }
  0x17   : > { %p1683_p6 = pnand %p1187_p5, %p51_p1  ;;  %s2163_s5 = sld [smem:[#allocation29_spill]] }
  0x18   : > { %s292_s22 = sshll.u32 %s2160_s3, 4  ;;  %s1584_s21 = smov [#allocation10]   ;;  %s293_s22 = int_to_ptr.hbm [resolvable:$true] %s292_s22 }
  0x19   : > { %s278_s26 = sshll.u32 %s2162_s2, 4  ;;  %s280_s1 = sshll.u32 %s1584_s21, 4  ;;  %s279_s26 = int_to_ptr.hbm [resolvable:$true] %s278_s26  ;;  %s281_s1 = int_to_ptr.vmem [resolvable:$true] %s280_s1 }
  0x1a   : > { %1190 = dma.hbm_to_vmem [thread:$0]  (!%p1683_p6), %s268_s15, 128, %s270_s19, [#allocation9]  }
  0x1b   : > { %1196 = dma.hbm_to_vmem [thread:$0]  (!%p1683_p6), %s293_s22, 6144, %s295_s28, [#allocation12], %s1582_s29, %s1582_s29, %s1583_s13  }
  0x1c   : > { %1193 = dma.hbm_to_vmem [thread:$0]  (!%p1683_p6), %s279_s26, 6144, %s281_s1, [#allocation9], %s1582_s29, %s1582_s29, %s1583_s13  }
  0x1d   : > { %s310_s20 = sshll.u32 %s2163_s5, 4  ;;  %s1585_s15 = smov [#allocation13]   ;;  %s311_s20 = int_to_ptr.hbm [resolvable:$true] %s310_s20 }
  0x1e   : > { %s312_s19 = sshll.u32 %s1585_s15, 4  ;;  %s2164_s6 = sld [smem:[#allocation30_spill]]  ;;  %s313_s19 = int_to_ptr.vmem [resolvable:$true] %s312_s19 }
  0x1f   : > { %1199 = dma.hbm_to_vmem [thread:$0]  (!%p1683_p6), %s311_s20, 48, %s313_s19, [#allocation12]  }
  0x20   : > { %s1586_s27 = smov [#allocation14]   ;;  %s2150_s26 = smov 128  }
  0x21   : > { %s323_s1 = sshll.u32 %s1586_s27, 4  ;;  %s2151_s28 = smov 8   ;;  %s324_s1 = int_to_ptr.vmem [resolvable:$true] %s323_s1 }
  0x22   : > { %s1134_s29 = sadd.s32 4294967294, %s1578_s12   ;;  %s1711_s13 = sadd.s32 1, %s1578_s12  }
  0x23   : > { %s37_s14 = sadd.s32 1, %s1574_s11  ;;  %s34_s18 = ssub.s32 %s1578_s12, %s1711_s13 }
  0x24   : > { %s321_s25 = sshll.u32 %s2164_s6, 4  ;;  %p44_p7 = scmp.ne.s32.totalorder %s1574_s11, %s1570_s10  ;;  %s322_s25 = int_to_ptr.hbm [resolvable:$true] %s321_s25 }
  0x25   : > { %1202 = dma.hbm_to_vmem [thread:$0]  (!%p1683_p6), %s322_s25, 2048, %s324_s1, [#allocation15], %s2150_s26, %s2150_s26, %s2151_s28  }
  0x26   : > { %p35_p8 = scmp.eq.s32.totalorder %s34_s18, 0  ;;  %p45_p9 = scmp.eq.s32.totalorder %s1578_s12, 0 }
  0x27   : > { %p50_p10 = scmp.ne.s32.totalorder %s1570_s10, %s1566_s30  ;;  %p2152_p11 = scmp.eq.s32.totalorder %s1666_s16, 2 }
  0x28   : > { %s1723_s20 = scalar_select %p35_p8, %s1574_s11, %s37_s14  }
  0x29   : > { %p46_p12 = por %p45_p9, %p44_p7  ;;  %p1727_p13 = por %p51_p1, %p50_p10 }
  0x2a   : > { %2165 = sst [smem:[#allocation25_spill]] %s1723_s20  ;;  %p1733_p0 = por %p2152_p11, %p44_p7 }
  0x2b   : > { %p227_p2 = scmp.eq.s32.totalorder %s1134_s29, 2  ;;  %p1216_p5 = scmp.lt.s32.totalorder %s1578_s12, 3 }
  0x2c   : > { %s340_s15 = sand.u32 1, %s1574_s11   ;;  %s1155_s25 = smul.u32 24, %s1578_s12 }
  0x2d   : > { %p1739_p6 = por %p227_p2, %p50_p10  ;;  %s1157_s22 = smul.u32 24, %s340_s15 }
  0x2e   : > { %p1743_p8 = pnand %p1216_p5, %p46_p12  ;;  %s349_s14 = scalar_lea.hbm %s2140_s0, %s1155_s25 }
  0x2f   : > { %s344_s18 = scalar_lea.vmem [#allocation5], %s1157_s22  ;;  %s350_s29 = sshll.u32 %s349_s14, 4  ;;  %s351_s29 = int_to_ptr.hbm [resolvable:$true] %s350_s29 }
  0x30   : > { %s352_s26 = sshll.u32 %s344_s18, 4  ;;  %s341_s28 = scalar_lea.sflag [#allocation6], %s340_s15  ;;  %s353_s26 = int_to_ptr.vmem [resolvable:$true] %s352_s26 }
  0x31   : > { %s1438_s2 = sshra.s32 %s351_s29, 4  ;;  %p1442_p9 = pneg %p1743_p8  ;;  %s1439_s2 = int_to_ptr.hbm [resolvable:$true] %s1438_s2 }
  0x32   : > { %s1440_s3 = scalar_lea.hbm %s1439_s2, 24  ;;  %s1445_s20 = scalar_lea.hbm %s2140_s0, 72 }
  0x33   : > { %p1441_p7 = scmp.ne.s32.totalorder %s1439_s2, %s1440_s3  ;;  %p1446_p2 = scmp.lt.s32.totalorder %s1439_s2, %s2140_s0 }
  0x34   : > { %p1447_p5 = scmp.lt.s32.totalorder %s1445_s20, %s1440_s3 }
  0x35   : > { %p1443_p10 = pnand %p1442_p9, %p1441_p7 }
  0x36   : > { %p1448_p11 = por %p1447_p5, %p1446_p2 }
  0x37   : > { %p1444_p12 = pneg %p1443_p10 }
  0x39   : > { %p1449_p3 = pnand %p1448_p11, %p1444_p12 }
  0x3b   : > { %1452 = shalt.err (!%p1449_p3)
}
  0x3c   : > { %s2170_s15 = smov 8   ;;  %s2171_s22 = smov 128  }
  0x3d   : > { %1206 = dma.hbm_to_vmem [thread:$0]  (!%p1743_p8), %s351_s29, 384, %s353_s26, %s341_s28, %s2171_s22, %s2171_s22, %s2170_s15  }
  0x3e   : > { %364 = sbr.rel (%p1672_p4) target bundleno = 793 (0x319), region = 52  ;;  %s1767_s5 = sand.u32 (!%p1672_p4), 1, %s1570_s10  }
  0x3f   : > { %s1158_s2 = smul.u32 (!%p1672_p4), 24, %s1767_s5  ;;  %s367_s3 = scalar_lea.sflag (!%p1672_p4), [#allocation6], %s1767_s5 }
  0x41   : > { %s1771_s6 = scalar_lea.vmem (!%p1672_p4), [#allocation5], %s1158_s2 }
  0x43   : > { %1541 = dma.done.wait (%p1727_p13), %s367_s3, 384  }
  0x44   : > { %1543 = vsyncadd (%p1727_p13), %s367_s3, 4294966912 }
  0x45   : > { %1545 = dma.done.wait (%p51_p1), [#allocation9], 6272  }
  0x46   : > { %1547 = vsyncadd (%p51_p1), [#allocation9], 4294961024 }
  0x47   : > { %1549 = dma.done.wait (%p51_p1), [#allocation12], 6192  }
  0x48   : > { %1551 = vsyncadd (%p51_p1), [#allocation12], 4294961104 }
  0x49   : > { %1553 = dma.done.wait (%p51_p1), [#allocation15], 2048  }
  0x4a   : > { %1555 = vsyncadd (%p51_p1), [#allocation15], 4294965248  ;;  %s1789_s17 = scalar_lea.vmem [#allocation16], %s1158_s2  ;;  %p2172_p3 = scmp.ne.s32.totalorder %s1666_s16, 0 }
  0x4c   : > { %436 = sbr.rel (%p2172_p3) target bundleno = 83 (0x53), region = 80 }
  0x51   : > { %v437_v0 = vld [vmem:[#allocation8] sm:$0xff] }
  0x52   : > { %438 = vst [vmem:[#allocation4] sm:$0xff] %v437_v0 }
  0x53 PF: > { %v487_v1 = vld [vmem:[#allocation10 + $0x168] sm:$0xff]  ;;  %v484_v2 = vld [vmem:[#allocation10 + $0x150] sm:$0xff]  ;;  %v481_v4 = vld [vmem:[#allocation10 + $0x138] sm:$0xff]  ;;  %s2059_s20 = smul.u32 3, %s1666_s16  ;;  %s1589_s26 = smov [#allocation17]  }
  0x54   : > { %498 = vmatpush.msra.mxu1 %v487_v1  ;;  %v1793_v3 = vld [vmem:[#allocation11 + $0x168] sm:$0xff]  ;;  %v1796_v5 = vld [vmem:[#allocation11 + $0x150] sm:$0xff]  ;;  %v1798_v6 = vld [vmem:[#allocation11 + $0x138] sm:$0xff]  ;;  %s1001_s28 = sshll.u32 %s1589_s26, 4  ;;  %p2173_p13 = scmp.eq.s32.totalorder %s1666_s16, 2  ;;  %s1002_s28 = int_to_ptr.vmem [resolvable:$true] %s1001_s28 }
  0x55   : > { %646 = vmatpush.msra.mxu3 %v1793_v3  ;;  %v478_v7 = vld [vmem:[#allocation10 + $0x120] sm:$0xff]  ;;  %v475_v9 = vld [vmem:[#allocation10 + $0x108] sm:$0xff]  ;;  %v472_v11 = vld [vmem:[#allocation10 + $0xf0] sm:$0xff]  ;;  %p723_p1 = scmp.lt.s32.totalorder %s2059_s20, 8  ;;  %s814_s29 = sadd.s32 1, %s2059_s20 }
  0x56   : > { %499 = vmatpush.msra.mxu1 %v484_v2  ;;  %v1801_v8 = vld [vmem:[#allocation11 + $0x120] sm:$0xff]  ;;  %v1804_v10 = vld [vmem:[#allocation11 + $0x108] sm:$0xff]  ;;  %v1807_v12 = vld [vmem:[#allocation11 + $0xf0] sm:$0xff]  ;;  %p815_p4 = scmp.lt.s32.totalorder %s814_s29, 8  ;;  %s907_s22 = sadd.s32 2, %s2059_s20 }
  0x57   : > { %647 = vmatpush.msra.mxu3 %v1796_v5  ;;  %v469_v13 = vld [vmem:[#allocation10 + $0xd8] sm:$0xff]  ;;  %v466_v15 = vld [vmem:[#allocation10 + $0xc0] sm:$0xff]  ;;  %v1813_v16 = vld [vmem:[#allocation11 + $0x170] sm:$0xff]  ;;  %s724_s23 = scalar_select %p723_p1, 1, 0 }
  0x58   : > { %500 = vmatpush.msra.mxu1 %v481_v4  ;;  %v1810_v14 = vld [vmem:[#allocation11 + $0xd8] sm:$0xff]  ;;  %v1815_v17 = vld [vmem:[#allocation11 + $0xc0] sm:$0xff]  ;;  %666 = vmatpush.msra.mxu0 %v1813_v16  ;;  %v463_v19 = vld [vmem:[#allocation10 + $0xa8] sm:$0xff]  ;;  %s816_s27 = scalar_select %p815_p4, 1, 0 }
  0x59   : > { %648 = vmatpush.msra.mxu3 %v1798_v6  ;;  %v1818_v18 = vld [vmem:[#allocation11 + $0x158] sm:$0xff]  ;;  %v1821_v20 = vld [vmem:[#allocation11 + $0x140] sm:$0xff]  ;;  %v1823_v21 = vld [vmem:[#allocation11 + $0xa8] sm:$0xff]  ;;  %s725_s24 = scvt.s32.f32 %s724_s23  ;;  %p908_p11 = scmp.lt.s32.totalorder %s907_s22, 8 }
  0x5a   : > { %501 = vmatpush.msra.mxu1 %v478_v7  ;;  %667 = vmatpush.msra.mxu0 %v1818_v18  ;;  %v460_v22 = vld [vmem:[#allocation10 + $0x90] sm:$0xff]  ;;  %v1827_v23 = vld [vmem:[#allocation11 + $0x128] sm:$0xff]  ;;  %v457_v25 = vld [vmem:[#allocation10 + $0x78] sm:$0xff]  ;;  %s817_s25 = scvt.s32.f32 %s816_s27  ;;  %s986_s27 = sshll.u32 %s1789_s17, 4  ;;  %s987_s27 = int_to_ptr.vmem [resolvable:$true] %s986_s27 }
  0x5b   : > { %649 = vmatpush.msra.mxu3 %v1801_v8  ;;  %v1829_v24 = vld [vmem:[#allocation11 + $0x90] sm:$0xff]  ;;  %v1835_v27 = vld [vmem:[#allocation11 + $0x78] sm:$0xff]  ;;  %v454_v28 = vld [vmem:[#allocation10 + $0x60] sm:$0xff]  ;;  %s728_s1 = ssub.f32 1.0, %s725_s24  ;;  %s1516_s26 = scalar_lea.hbm %s2148_s8, 72 }
  0x5c   : > { %502 = vmatpush.msra.mxu1 %v475_v9  ;;  %668 = vmatpush.msra.mxu0 %v1821_v20  ;;  %v1833_v26 = vld [vmem:[#allocation11 + $0x110] sm:$0xff]  ;;  %v1839_v29 = vld [vmem:[#allocation11 + $0xf8] sm:$0xff]  ;;  %v1841_v30 = vld [vmem:[#allocation11 + $0x60] sm:$0xff]  ;;  %s820_s15 = ssub.f32 1.0, %s817_s25 }
  0x5d   : > { %650 = vmatpush.msra.mxu3 %v1804_v10  ;;  %v451_v31 = vld [vmem:[#allocation10 + $0x48] sm:$0xff]  ;;  %v1845_v32 = vld [vmem:[#allocation11 + $0xe0] sm:$0xff]  ;;  %v448_v34 = vld [vmem:[#allocation10 + $0x30] sm:$0xff]  ;;  %s909_s2 = scalar_select %p908_p11, 1, 0 }
  0x5e   : > { %503 = vmatpush.msra.mxu1 %v472_v11  ;;  %669 = vmatpush.msra.mxu0 %v1827_v23  ;;  %v1847_v33 = vld [vmem:[#allocation11 + $0x48] sm:$0xff]  ;;  %v1853_v36 = vld [vmem:[#allocation11 + $0x30] sm:$0xff]  ;;  %v445_v37 = vld [vmem:[#allocation10 + $0x18] sm:$0xff] }
  0x5f   : > { %651 = vmatpush.msra.mxu3 %v1807_v12  ;;  %v1851_v35 = vld [vmem:[#allocation11 + $0xc8] sm:$0xff]  ;;  %v1857_v38 = vld [vmem:[#allocation11 + $0xb0] sm:$0xff]  ;;  %v489_v39 = vld [vmem:[#allocation10 + $0x178] sm:$0xff]  ;;  %s910_s3 = scvt.s32.f32 %s909_s2 }
  0x60   : > { %504 = vmatpush.msra.mxu1 %v469_v13  ;;  %670 = vmatpush.msra.mxu0 %v1833_v26  ;;  %v1859_v40 = vld [vmem:[#allocation11 + $0x18] sm:$0xff]  ;;  %v442_v41 = vld [vmem:[#allocation10] sm:$0xff]  ;;  %v488_v44 = vld [vmem:[#allocation10 + $0x170] sm:$0xff] }
  0x61   : > { %652 = vmatpush.msra.mxu3 %v1810_v14  ;;  %v1863_v42 = vld [vmem:[#allocation11 + $0x98] sm:$0xff]  ;;  %550 = vmatpush.msra.mxu2 %v489_v39  ;;  %v486_v43 = vld [vmem:[#allocation10 + $0x160] sm:$0xff]  ;;  %v483_v50 = vld [vmem:[#allocation10 + $0x148] sm:$0xff] }
  0x62   : > { %505 = vmatpush.msra.mxu1 %v466_v15  ;;  %671 = vmatpush.msra.mxu0 %v1839_v29  ;;  %v1865_v45 = vld [vmem:[#allocation11] sm:$0xff]  ;;  %v485_v48 = vld [vmem:[#allocation10 + $0x158] sm:$0xff]  ;;  %v1880_v52 = vld [vmem:[#allocation11 + $0x68] sm:$0xff] }
  0x63   : > { %653 = vmatpush.msra.mxu3 %v1815_v17  ;;  %v1869_v46 = vld [vmem:[#allocation4] sm:$0xff]  ;;  %551 = vmatpush.msra.mxu2 %v486_v43  ;;  %v480_v53 = vld [vmem:[#allocation10 + $0x130] sm:$0xff]  ;;  %v479_v54 = vld [vmem:[#allocation10 + $0x128] sm:$0xff] }
  0x64   : > { %506 = vmatpush.msra.mxu1 %v463_v19  ;;  %672 = vmatpush.msra.mxu0 %v1845_v32  ;;  %v1872_v47 = vld [vmem:[%s1771_s6] sm:$0xff]  ;;  %v1883_v55 = vld [vmem:[#allocation11 + $0x50] sm:$0xff]  ;;  %v477_v56 = vld [vmem:[#allocation10 + $0x118] sm:$0xff] }
  0x65   : > { %654 = vmatpush.msra.mxu3 %v1823_v21  ;;  %v1875_v49 = vld [vmem:[#allocation11 + $0x80] sm:$0xff]  ;;  %552 = vmatpush.msra.mxu2 %v483_v50  ;;  %v476_v57 = vld [vmem:[#allocation10 + $0x110] sm:$0xff]  ;;  %v1887_v58 = vld [vmem:[#allocation11 + $0x38] sm:$0xff] }
  0x66   : > { %507 = vmatpush.msra.mxu1 %v460_v22  ;;  %673 = vmatpush.msra.mxu0 %v1851_v35  ;;  %v482_v51 = vld [vmem:[#allocation10 + $0x140] sm:$0xff]  ;;  %v1891_v59 = vld [vmem:[%s1771_s6 + $0x8] sm:$0xff]  ;;  %v473_v61 = vld [vmem:[#allocation10 + $0xf8] sm:$0xff] }
  0x67   : > { %655 = vmatpush.msra.mxu3 %v1829_v24  ;;  %553 = vmatpush.msra.mxu2 %v480_v53  ;;  %v474_v60 = vld [vmem:[#allocation10 + $0x100] sm:$0xff]  ;;  %v471_v63 = vld [vmem:[#allocation10 + $0xe8] sm:$0xff]  ;;  %v468_v2 = vld [vmem:[#allocation10 + $0xd0] sm:$0xff] }
  0x68   : > { %508 = vmatpush.msra.mxu1 %v457_v25  ;;  %674 = vmatpush.msra.mxu0 %v1857_v38  ;;  %v1894_v62 = vld [vmem:[#allocation11 + $0x20] sm:$0xff]  ;;  %v1899_v1 = vld [vmem:[#allocation11 + $0x8] sm:$0xff]  ;;  %v465_v7 = vld [vmem:[#allocation10 + $0xb8] sm:$0xff] }
  0x69   : > { %656 = vmatpush.msra.mxu3 %v1835_v27  ;;  %554 = vmatpush.msra.mxu2 %v477_v56  ;;  %v470_v0 = vld [vmem:[#allocation10 + $0xe0] sm:$0xff]  ;;  %v467_v4 = vld [vmem:[#allocation10 + $0xc8] sm:$0xff]  ;;  %v464_v9 = vld [vmem:[#allocation10 + $0xb0] sm:$0xff] }
  0x6a   : > { %509 = vmatpush.msra.mxu1 %v454_v28  ;;  %675 = vmatpush.msra.mxu0 %v1863_v42  ;;  %v1904_v11 = vld [vmem:[#allocation11 + $0x178] sm:$0xff]  ;;  %v462_v15 = vld [vmem:[#allocation10 + $0xa0] sm:$0xff]  ;;  %v459_v25 = vld [vmem:[#allocation10 + $0x88] sm:$0xff] }
  0x6b   : > { %657 = vmatpush.msra.mxu3 %v1841_v30  ;;  %555 = vmatpush.msra.mxu2 %v474_v60  ;;  %v1908_v13 = vld [vmem:[%s1771_s6 + $0x10] sm:$0xff]  ;;  %v1911_v22 = vld [vmem:[#allocation11 + $0x160] sm:$0xff]  ;;  %v447_v53 = vld [vmem:[#allocation10 + $0x28] sm:$0xff]  ;;  %s913_s6 = ssub.f32 1.0, %s910_s3 }
  0x6c   : > { %510 = vmatpush.msra.mxu1 %v451_v31  ;;  %676 = vmatpush.msra.mxu0 %v1875_v49  ;;  %v461_v19 = vld [vmem:[#allocation10 + $0x98] sm:$0xff]  ;;  %v458_v28 = vld [vmem:[#allocation10 + $0x80] sm:$0xff]  ;;  %v1916_v31 = vld [vmem:[#allocation11 + $0x148] sm:$0xff] }
  0x6d   : > { %658 = vmatpush.msra.mxu3 %v1847_v33  ;;  %556 = vmatpush.msra.mxu2 %v471_v63  ;;  %v1919_v39 = vld [vmem:[#allocation11 + $0x130] sm:$0xff]  ;;  %v449_v50 = vld [vmem:[#allocation10 + $0x38] sm:$0xff]  ;;  %v1931_v56 = vld [vmem:[#allocation11 + $0xe8] sm:$0xff] }
  0x6e   : > { %511 = vmatpush.msra.mxu1 %v448_v34  ;;  %677 = vmatpush.msra.mxu0 %v1880_v52  ;;  %v456_v34 = vld [vmem:[#allocation10 + $0x70] sm:$0xff]  ;;  %v443_v60 = vld [vmem:[#allocation10 + $0x8] sm:$0xff]  ;;  %v1940_v63 = vld [vmem:[#allocation11 + $0xb8] sm:$0xff] }
  0x6f   : > { %659 = vmatpush.msra.mxu3 %v1853_v36  ;;  %557 = vmatpush.msra.mxu2 %v468_v2  ;;  %v452_v43 = vld [vmem:[#allocation10 + $0x50] sm:$0xff]  ;;  %v1951_v2 = vld [vmem:[#allocation11 + $0x88] sm:$0xff] }
  0x70   : > { %512 = vmatpush.msra.mxu1 %v445_v37  ;;  %678 = vmatpush.msra.mxu0 %v1883_v55  ;;  %v455_v37 = vld [vmem:[#allocation10 + $0x68] sm:$0xff] }
  0x71   : > { %660 = vmatpush.msra.mxu3 %v1859_v40  ;;  %558 = vmatpush.msra.mxu2 %v465_v7  ;;  %v593_v7 = vld [vmem:[#allocation11 + $0x40] sm:$0xff] }
  0x72   : > { %513 = vmatpush.msra.mxu1 %v442_v41  ;;  %679 = vmatpush.msra.mxu0 %v1887_v58  ;;  %v453_v41 = vld [vmem:[#allocation10 + $0x58] sm:$0xff] }
  0x73   : > { %661 = vmatpush.msra.mxu3 %v1865_v45  ;;  %514 = vmatmul.f32.vlgmr.msra.gmra.mxu1 %v1872_v47 }
  0x74   : > { %524 = vmatpush.msrb.mxu1 %v488_v44  ;;  %662 = vmatmul.f32.vlgmr.msra.gmra.mxu3 %v1869_v46  ;;  %v1923_v44 = vld [vmem:[#allocation11 + $0x118] sm:$0xff] }
  0x75   : > { %757 = vmatpush.msrb.mxu3 %v1813_v16  ;;  %680 = vmatpush.msra.mxu0 %v1894_v62 }
  0x76   : > { %525 = vmatpush.msrb.mxu1 %v485_v48  ;;  %559 = vmatpush.msra.mxu2 %v462_v15  ;;  %v450_v48 = vld [vmem:[#allocation10 + $0x40] sm:$0xff]  ;;  %v587_v15 = vld [vmem:[#allocation11 + $0x10] sm:$0xff] }
  0x77   : > { %758 = vmatpush.msrb.mxu3 %v1818_v18  ;;  %681 = vmatpush.msra.mxu0 %v1899_v1 }
  0x78   : > { %526 = vmatpush.msrb.mxu1 %v482_v51  ;;  %682 = vmatmul.f32.vlgmr.msra.gmra.mxu0 %v1869_v46  ;;  %v1927_v51 = vld [vmem:[#allocation11 + $0x100] sm:$0xff] }
  0x79   : > { %759 = vmatpush.msrb.mxu3 %v1821_v20  ;;  %777 = vmatpush.msrb.mxu0 %v1904_v11 }
  0x7a   : > { %527 = vmatpush.msrb.mxu1 %v479_v54  ;;  %560 = vmatpush.msra.mxu2 %v459_v25  ;;  %v446_v54 = vld [vmem:[#allocation10 + $0x20] sm:$0xff] }
  0x7b   : > { %517 = vmatmul.f32.gmra.mxu1 %v1891_v59  ;;  %760 = vmatpush.msrb.mxu3 %v1827_v23 }
  0x7c   : > { %528 = vmatpush.msrb.mxu1 %v476_v57  ;;  %778 = vmatpush.msrb.mxu0 %v1911_v22  ;;  %v444_v57 = vld [vmem:[#allocation10 + $0x10] sm:$0xff] }
  0x7d   : > { %761 = vmatpush.msrb.mxu3 %v1833_v26  ;;  %561 = vmatpush.msra.mxu2 %v456_v34  ;;  %v924_v34 = vld [vmem:[#allocation14 + $0x8] sm:$0xff] }
  0x7e   : > { %529 = vmatpush.msrb.mxu1 %v473_v61  ;;  %779 = vmatpush.msrb.mxu0 %v1916_v31  ;;  %v1935_v61 = vld [vmem:[#allocation11 + $0xd0] sm:$0xff] }
  0x7f   : > { %762 = vmatpush.msrb.mxu3 %v1839_v29  ;;  %562 = vmatpush.msra.mxu2 %v453_v41 }
  0x80   : > { %530 = vmatpush.msrb.mxu1 %v470_v0  ;;  %780 = vmatpush.msrb.mxu0 %v1919_v39  ;;  %v1946_v0 = vld [vmem:[#allocation11 + $0xa0] sm:$0xff] }
  0x81   : > { %763 = vmatpush.msrb.mxu3 %v1845_v32  ;;  %563 = vmatpush.msra.mxu2 %v450_v48 }
  0x82   : > { %531 = vmatpush.msrb.mxu1 %v467_v4  ;;  %781 = vmatpush.msrb.mxu0 %v1923_v44  ;;  %v1957_v4 = vld [vmem:[#allocation11 + $0x70] sm:$0xff] }
  0x83   : > { %520 = vmatmul.f32.gmra.mxu1 %v1908_v13  ;;  %764 = vmatpush.msrb.mxu3 %v1851_v35 }
  0x84   : > { %532 = vmatpush.msrb.mxu1 %v464_v9  ;;  %782 = vmatpush.msrb.mxu0 %v1927_v51  ;;  %v590_v9 = vld [vmem:[#allocation11 + $0x28] sm:$0xff] }
  0x85   : > { %765 = vmatpush.msrb.mxu3 %v1857_v38  ;;  %564 = vmatpush.msra.mxu2 %v447_v53 }
  0x86   : > { %533 = vmatpush.msrb.mxu1 %v461_v19  ;;  %783 = vmatpush.msrb.mxu0 %v1931_v56 }
  0x87   : > { %766 = vmatpush.msrb.mxu3 %v1863_v42  ;;  %565 = vmatpush.msra.mxu2 %v444_v57 }
  0x88   : > { %534 = vmatpush.msrb.mxu1 %v458_v28  ;;  %784 = vmatpush.msrb.mxu0 %v1935_v61  ;;  %v926_v28 = vld [vmem:[#allocation14 + $0x18] sm:$0xff] }
  0x89   : > { %767 = vmatpush.msrb.mxu3 %v1875_v49  ;;  %566 = vmatmul.f32.vlgmr.msra.gmra.mxu2 %v1872_v47 }
  0x8a   : > { %535 = vmatpush.msrb.mxu1 %v455_v37  ;;  %785 = vmatpush.msrb.mxu0 %v1940_v63 }
  0x8b   : > { %737 = vmatpush.msrb.mxu2 %v1793_v3  ;;  %768 = vmatpush.msrb.mxu3 %v1880_v52 }
  0x8c   : > { %536 = vmatpush.msrb.mxu1 %v452_v43  ;;  %786 = vmatpush.msrb.mxu0 %v1946_v0 }
  0x8d   : > { %738 = vmatpush.msrb.mxu2 %v1796_v5  ;;  %769 = vmatpush.msrb.mxu3 %v1883_v55 }
  0x8e   : > { %537 = vmatpush.msrb.mxu1 %v449_v50  ;;  %787 = vmatpush.msrb.mxu0 %v1951_v2 }
  0x8f   : > { %739 = vmatpush.msrb.mxu2 %v1798_v6  ;;  %770 = vmatpush.msrb.mxu3 %v1887_v58 }
  0x90   : > { %538 = vmatpush.msrb.mxu1 %v446_v54  ;;  %788 = vmatpush.msrb.mxu0 %v1957_v4 }
  0x91   : > { %740 = vmatpush.msrb.mxu2 %v1801_v8  ;;  %771 = vmatpush.msrb.mxu3 %v1894_v62 }
  0x92   : > { %539 = vmatpush.msrb.mxu1 %v443_v60  ;;  %569 = vmatmul.f32.gmra.mxu2 %v1891_v59 }
  0x93   : > { %540 = vmatmul.f32.vlgmr.msrb.gmra.mxu1 %v1872_v47  ;;  %v1963_v47 = vld [vmem:[#allocation11 + $0x58] sm:$0xff]  ;;  %741 = vmatpush.msrb.mxu2 %v1804_v10 }
  0x94   : > { %686 = vmatpush.msra.mxu1 %v1904_v11  ;;  %789 = vmatpush.msrb.mxu0 %v1963_v47 }
  0x95   : > { %742 = vmatpush.msrb.mxu2 %v1807_v12  ;;  %772 = vmatpush.msrb.mxu3 %v1899_v1 }
  0x96   : > { %687 = vmatpush.msra.mxu1 %v1911_v22  ;;  %790 = vmatpush.msrb.mxu0 %v593_v7 }
  0x97   : > { %743 = vmatpush.msrb.mxu2 %v1810_v14  ;;  %870 = vmatpush.msra.mxu3 %v1904_v11  ;;  %v928_v11 = vld [vmem:[#allocation14 + $0x28] sm:$0xff] }
  0x98   : > { %688 = vmatpush.msra.mxu1 %v1916_v31  ;;  %791 = vmatpush.msrb.mxu0 %v590_v9 }
  0x99   : > { %744 = vmatpush.msrb.mxu2 %v1815_v17  ;;  %871 = vmatpush.msra.mxu3 %v1911_v22  ;;  %v927_v22 = vld [vmem:[#allocation14 + $0x20] sm:$0xff] }
  0x9a   : > { %689 = vmatpush.msra.mxu1 %v1919_v39  ;;  %792 = vmatpush.msrb.mxu0 %v587_v15 }
  0x9b   : > { %543 = vmatmul.f32.gmra.mxu1 %v1891_v59  ;;  %745 = vmatpush.msrb.mxu2 %v1823_v21 }
  0x9c   : > { %690 = vmatpush.msra.mxu1 %v1923_v44  ;;  %872 = vmatpush.msra.mxu3 %v1916_v31  ;;  %v925_v31 = vld [vmem:[#allocation14 + $0x10] sm:$0xff] }
  0x9d   : > { %746 = vmatpush.msrb.mxu2 %v1829_v24 }
  0x9e   : > { %691 = vmatpush.msra.mxu1 %v1927_v51  ;;  %873 = vmatpush.msra.mxu3 %v1919_v39  ;;  %v923_v39 = vld [vmem:[#allocation14] sm:$0xff] }
  0x9f   : > { %747 = vmatpush.msrb.mxu2 %v1835_v27 }
  0xa0   : > { %692 = vmatpush.msra.mxu1 %v1931_v56  ;;  %572 = vmatmul.f32.gmra.mxu2 %v1908_v13 }
  0xa1   : > { %748 = vmatpush.msrb.mxu2 %v1841_v30  ;;  %874 = vmatpush.msra.mxu3 %v1923_v44 }
  0xa2   : > { %693 = vmatpush.msra.mxu1 %v1935_v61 }
  0xa3   : > { %546 = vmatmul.f32.gmra.mxu1 %v1908_v13  ;;  %749 = vmatpush.msrb.mxu2 %v1847_v33 }
  0xa4   : > { %694 = vmatpush.msra.mxu1 %v1940_v63  ;;  %875 = vmatpush.msra.mxu3 %v1927_v51 }
  0xa5   : > { %750 = vmatpush.msrb.mxu2 %v1853_v36 }
  0xa6   : > { %695 = vmatpush.msra.mxu1 %v1946_v0  ;;  %876 = vmatpush.msra.mxu3 %v1931_v56 }
  0xa7   : > { %751 = vmatpush.msrb.mxu2 %v1859_v40 }
  0xa8   : > { %696 = vmatpush.msra.mxu1 %v1951_v2  ;;  %877 = vmatpush.msra.mxu3 %v1935_v61 }
  0xa9   : > { %752 = vmatpush.msrb.mxu2 %v1865_v45 }
  0xaa   : > { %697 = vmatpush.msra.mxu1 %v1957_v4  ;;  %878 = vmatpush.msra.mxu3 %v1940_v63 }
  0xab   : > { %850 = vmatpush.msra.mxu2 %v1813_v16  ;;  %v938_v16 = vld [vmem:[#allocation14 + $0x78] sm:$0xff] }
  0xac   : > { %698 = vmatpush.msra.mxu1 %v1963_v47  ;;  %879 = vmatpush.msra.mxu3 %v1946_v0 }
  0xad   : > { %851 = vmatpush.msra.mxu2 %v1818_v18  ;;  %943 = vmatpush.msra.mxu0 %v938_v16  ;;  %v633_v18 = vld [vmem:[#allocation13] sm:$0x7] }
  0xae   : > { %699 = vmatpush.msra.mxu1 %v593_v7  ;;  %880 = vmatpush.msra.mxu3 %v1951_v2  ;;  %v2061_v41 = vperm.slane %v633_v18, 2 }
  0xaf   : > { %852 = vmatpush.msra.mxu2 %v1821_v20 }
  0xb0   : > { %700 = vmatpush.msra.mxu1 %v590_v9  ;;  %881 = vmatpush.msra.mxu3 %v1957_v4  ;;  %v729_v4 = vstv %s728_s1  ;;  %s1156_s1 = smul.u32 24, %s1666_s16 }
  0xb1   : > { %853 = vmatpush.msra.mxu2 %v1827_v23  ;;  %v2048_v23 = vperm.slane %v633_v18, 0 }
  0xb2   : > { %701 = vmatpush.msra.mxu1 %v587_v15  ;;  %882 = vmatpush.msra.mxu3 %v1963_v47  ;;  %s985_s29 = scalar_lea.hbm %s2148_s8, %s1156_s1 }
  0xb3   : > { %702 = vmatmul.f32.vlgmr.msra.gmra.mxu1 %v1869_v46  ;;  %854 = vmatpush.msra.mxu2 %v1833_v26 }
  0xb4   : > { %830 = vmatpush.msrb.mxu1 %v1793_v3  ;;  %883 = vmatpush.msra.mxu3 %v593_v7 }
  0xb5   : > { %855 = vmatpush.msra.mxu2 %v1839_v29 }
  0xb6   : > { %831 = vmatpush.msrb.mxu1 %v1796_v5  ;;  %884 = vmatpush.msra.mxu3 %v590_v9  ;;  %v490_v5 = vld [vmem:[%s2144_s4] sm:$0x7]  ;;  %v726_v9 = vstv %s725_s24  ;;  %s1003_s24 = sshll.u32 %s2149_s9, 4  ;;  %s1004_s24 = int_to_ptr.hbm [resolvable:$true] %s1003_s24 }
  0xb7   : > { %856 = vmatpush.msra.mxu2 %v1845_v32  ;;  %v933_v32 = vld [vmem:[#allocation14 + $0x50] sm:$0xff]  ;;  %v2063_v44 = vperm.slane %v490_v5, 2 }
  0xb8   : > { %832 = vmatpush.msrb.mxu1 %v1798_v6  ;;  %885 = vmatpush.msra.mxu3 %v587_v15  ;;  %v492_v6 = vperm.slane %v490_v5, 0 }
  0xb9   : > { %857 = vmatpush.msra.mxu2 %v1851_v35 }
  0xba   : > { %833 = vmatpush.msrb.mxu1 %v1801_v8 }
  0xbb   : > { %858 = vmatpush.msra.mxu2 %v1857_v38  ;;  %v2051_v38 = vperm.slane %v633_v18, 1 }
  0xbc   : > { %834 = vmatpush.msrb.mxu1 %v1804_v10 }
  0xbd   : > { %859 = vmatpush.msra.mxu2 %v1863_v42 }
  0xbe   : > { %835 = vmatpush.msrb.mxu1 %v1807_v12 }
  0xbf   : > { %860 = vmatpush.msra.mxu2 %v1875_v49  ;;  %v931_v49 = vld [vmem:[#allocation14 + $0x40] sm:$0xff] }
  0xc0   : > { %836 = vmatpush.msrb.mxu1 %v1810_v14 }
  0xc1   : > { %861 = vmatpush.msra.mxu2 %v1880_v52  ;;  %v930_v52 = vld [vmem:[#allocation14 + $0x38] sm:$0xff] }
  0xc2   : > { %837 = vmatpush.msrb.mxu1 %v1815_v17  ;;  %v937_v17 = vld [vmem:[#allocation14 + $0x70] sm:$0xff] }
  0xc3   : > { %862 = vmatpush.msra.mxu2 %v1883_v55  ;;  %944 = vmatpush.msra.mxu0 %v937_v17 }
  0xc4   : > { %838 = vmatpush.msrb.mxu1 %v1823_v21  ;;  %v936_v21 = vld [vmem:[#allocation14 + $0x68] sm:$0xff] }
  0xc5   : > { %863 = vmatpush.msra.mxu2 %v1887_v58  ;;  %945 = vmatpush.msra.mxu0 %v936_v21 }
  0xc6   : > { %839 = vmatpush.msrb.mxu1 %v1829_v24  ;;  %v935_v24 = vld [vmem:[#allocation14 + $0x60] sm:$0xff] }
  0xc7   : > { %864 = vmatpush.msra.mxu2 %v1894_v62  ;;  %946 = vmatpush.msra.mxu0 %v935_v24  ;;  %v929_v62 = vld [vmem:[#allocation14 + $0x30] sm:$0xff] }
  0xc8   : > { %840 = vmatpush.msrb.mxu1 %v1835_v27  ;;  %v934_v27 = vld [vmem:[#allocation14 + $0x58] sm:$0xff] }
  0xc9   : > { %865 = vmatpush.msra.mxu2 %v1899_v1  ;;  %947 = vmatpush.msra.mxu0 %v934_v27 }
  0xca   : > { %841 = vmatpush.msrb.mxu1 %v1841_v30 }
  0xcb   : > { %948 = vmatpush.msra.mxu0 %v933_v32 }
  0xcc   : > { %842 = vmatpush.msrb.mxu1 %v1847_v33  ;;  %v493_v33 = vperm.slane %v490_v5, 1 }
  0xce   : > { %843 = vmatpush.msrb.mxu1 %v1853_v36  ;;  %v932_v36 = vld [vmem:[#allocation14 + $0x48] sm:$0xff] }
  0xcf   : > { %949 = vmatpush.msra.mxu0 %v932_v36 }
  0xd0   : > { %844 = vmatpush.msrb.mxu1 %v1859_v40 }
  0xd1   : > { %950 = vmatpush.msra.mxu0 %v931_v49 }
  0xd2   : > { %845 = vmatpush.msrb.mxu1 %v1865_v45 }
  0xd3   : > { %951 = vmatpush.msra.mxu0 %v930_v52 }
  0xd5   : > { %952 = vmatpush.msra.mxu0 %v929_v62 }
  0xd7   : > { %953 = vmatpush.msra.mxu0 %v928_v11  ;;  %v818_v11 = vstv %s817_s25  ;;  %s988_s25 = sshll.u32 %s985_s29, 4  ;;  %s989_s25 = int_to_ptr.hbm [resolvable:$true] %s988_s25 }
  0xd8   : > { %s1510_s22 = sshra.s32 %s989_s25, 4  ;;  %s1511_s22 = int_to_ptr.hbm [resolvable:$true] %s1510_s22 }
  0xd9   : > { %954 = vmatpush.msra.mxu0 %v927_v22  ;;  %s1512_s2 = scalar_lea.hbm %s1511_s22, 24  ;;  %p1517_p10 = scmp.lt.s32.totalorder %s1511_s22, %s2148_s8 }
  0xda   : > { %p1513_p8 = scmp.ne.s32.totalorder %s1511_s22, %s1512_s2  ;;  %p1518_p12 = scmp.lt.s32.totalorder %s1516_s26, %s1512_s2 }
  0xdb   : > { %955 = vmatpush.msra.mxu0 %v926_v28 }
  0xdc   : > { %p1514_p7 = pnand %p1513_p8, %p1733_p0  ;;  %p1519_p2 = por %p1518_p12, %p1517_p10 }
  0xdd   : > { %956 = vmatpush.msra.mxu0 %v925_v31 }
  0xde   : > { %p1515_p9 = pneg %p1514_p7 }
  0xdf   : > { %957 = vmatpush.msra.mxu0 %v924_v34 }
  0xe0   : > { %p1520_p5 = pnand %p1519_p2, %p1515_p9 }
  0xe1   : > { %958 = vmatpush.msra.mxu0 %v923_v39 }
  0xf0   : > { %v515_v3 = vpop.f32.mrf.mxu1 }
  0xf1   : > { %v516_v29 = vadd.f32 %v515_v3, %v492_v6  ;;  %v730_v3 = vmul.f32 %v729_v4, %v1869_v46 }
  0xf5   : > { %v683_v45 = vpop.f32.mrf.mxu0 }
  0xf6   : > { %v684_v58 = vadd.f32 %v683_v45, %v2051_v38 }
  0xf7   : > { %v663_v26 = vpop.f32.mrf.mxu3 }
  0xf8   : > { %v518_v8 = vpop.f32.mrf.mxu1  ;;  %v664_v30 = vadd.f32 %v663_v26, %v2048_v23 }
  0xf9   : > { %v2044_v10 = vadd.f32 %v518_v8, %v492_v6 }
  0xfa   : > { %v706_v42 = vadd.f32 %v664_v30, %v516_v29 }
  0xfc   : > { %v707_v59 = vmul.f32 0.5, %v706_v42 }
  0xfe   : > { %1270 = vtanh.f32 %v707_v59 }
 0x100   : > { %v521_v12 = vpop.f32.mrf.mxu1 }
 0x101   : > { %v2046_v14 = vadd.f32 %v521_v12, %v492_v6 }
 0x104   : > { %v1271_v37 = vpop.eup %1270 }
 0x105   : > { %v709_v43 = vadd.f32 1.0, %v1271_v37 }
 0x107   : > { %v710_v54 = vmul.f32 0.5, %v709_v43 }
 0x10c   : > { %v567_v48 = vpop.f32.mrf.mxu2 }
 0x10d   : > { %v568_v56 = vadd.f32 %v567_v48, %v2063_v44 }
 0x110   : > { %v541_v20 = vpop.f32.mrf.mxu1 }
 0x111   : > { %v542_v55 = vadd.f32 %v541_v20, %v493_v33  ;;  %v2075_v20 = vld [vmem:[%s2147_s7] ss:$0 sm:$0xff] }
 0x113   : > { %v711_v13 = vadd.f32 %v684_v58, %v542_v55 }
 0x115   : > { %v712_v25 = vmul.f32 0.5, %v711_v13  ;;  %v570_v8 = vpop.f32.mrf.mxu2  ;;  %v821_v13 = vstv %s820_s15  ;;  %s974_s15 = scalar_lea.sflag [#allocation7], %s1767_s5 }
 0x117   : > { %1272 = vtanh.f32 %v712_v25 }
 0x118   : > { %v544_v35 = vpop.f32.mrf.mxu1 }
 0x119   : > { %v2053_v40 = vadd.f32 %v544_v35, %v493_v33 }
 0x11d   : > { %v1273_v51 = vpop.eup %1272 }
 0x11e   : > { %v714_v60 = vadd.f32 1.0, %v1273_v51 }
 0x120   : > { %v547_v1 = vpop.f32.mrf.mxu1  ;;  %v715_v63 = vmul.f32 0.5, %v714_v60 }
 0x121   : > { %v2056_v19 = vadd.f32 %v547_v1, %v493_v33 }
 0x122   : > { %v719_v0 = vsub.f32 1.0, %v715_v63  ;;  %v721_v47 = vmul.f32 %v715_v63, %v1869_v46 }
 0x123   : > { %v2070_v12 = vpop.f32.mrf.mxu2 }
 0x130   : > { %v703_v50 = vpop.f32.mrf.mxu1 }
 0x131   : > { %v704_v53 = vadd.f32 %v703_v50, %v2061_v41 }
 0x133   : > { %v716_v57 = vmul.f32 %v710_v54, %v704_v53 }
 0x135   : > { %v717_v61 = vadd.f32 %v716_v57, %v568_v56 }
 0x137   : > { %1274 = vtanh.f32 %v717_v61 }
 0x13d   : > { %v1275_v2 = vpop.eup %1274 }
 0x13e   : > { %v720_v7 = vmul.f32 %v1275_v2, %v719_v0 }
 0x140   : > { %v722_v15 = vadd.f32 %v721_v47, %v720_v7 }
 0x142   : > { %v727_v5 = vmul.f32 %v726_v9, %v722_v15 }
 0x144   : > { %v731_v6 = vadd.f32 %v730_v3, %v727_v5  ;;  %v914_v3 = vstv %s913_s6 }
 0x146   : > { %753 = vmatmul.f32.vlgmr.msrb.gmra.mxu2 %v731_v6  ;;  %773 = vmatmul.f32.vlgmr.msrb.gmra.mxu3 %v731_v6  ;;  %v822_v28 = vmul.f32 %v821_v13, %v731_v6 }
 0x147   : > { %793 = vmatmul.f32.vlgmr.msrb.gmra.mxu0 %v731_v6 }
 0x14f   : > { %959 = vmatmul.f32.vlgmr.msra.gmra.mxu0 %v731_v6 }
 0x1c4   : > { %v794_v16 = vpop.f32.mrf.mxu0 }
 0x1c5   : > { %v795_v42 = vadd.f32 %v794_v16, %v2061_v41 }
 0x1c9   : > { %v754_v17 = vpop.f32.mrf.mxu2  ;;  %v774_v18 = vpop.f32.mrf.mxu3 }
 0x1ca   : > { %v755_v46 = vadd.f32 %v754_v17, %v2048_v23  ;;  %v775_v21 = vadd.f32 %v774_v18, %v2051_v38 }
 0x1cc   : > { %v797_v24 = vadd.f32 %v755_v46, %v2044_v10  ;;  %v802_v26 = vadd.f32 %v775_v21, %v2053_v40  ;;  %v960_v27 = vpop.f32.mrf.mxu0  ;;  %v571_v10 = vadd.f32 %v570_v8, %v2063_v44 }
 0x1cd   : > { %v961_v29 = vadd.f32 %v2075_v20, %v960_v27 }
 0x1ce   : > { %v798_v30 = vmul.f32 0.5, %v797_v24  ;;  %v803_v32 = vmul.f32 0.5, %v802_v26 }
 0x1cf   : > { %969 = vst [vmem:[%s1789_s17] sm:$0xff] %v961_v29 }
 0x1d0   : > { %1276 = vtanh.f32 %v798_v30 }
 0x1d1   : > { %1278 = vtanh.f32 %v803_v32 }
 0x1d6   : > { %v1277_v33 = vpop.eup %1276 }
 0x1d7   : > { %v800_v35 = vadd.f32 1.0, %v1277_v33  ;;  %v1279_v36 = vpop.eup %1278 }
 0x1d8   : > { %v805_v40 = vadd.f32 1.0, %v1279_v36 }
 0x1d9   : > { %v801_v45 = vmul.f32 0.5, %v800_v35 }
 0x1da   : > { %v806_v55 = vmul.f32 0.5, %v805_v40 }
 0x1db   : > { %v807_v49 = vmul.f32 %v801_v45, %v795_v42 }
 0x1dc   : > { %v810_v58 = vsub.f32 1.0, %v806_v55  ;;  %v812_v1 = vmul.f32 %v806_v55, %v731_v6 }
 0x1dd   : > { %v808_v52 = vadd.f32 %v807_v49, %v571_v10 }
 0x1df   : > { %1280 = vtanh.f32 %v808_v52 }
 0x1e5   : > { %v1281_v59 = vpop.eup %1280 }
 0x1e6   : > { %v811_v62 = vmul.f32 %v1281_v59, %v810_v58 }
 0x1e8   : > { %v813_v22 = vadd.f32 %v812_v1, %v811_v62 }
 0x1ea   : > { %v819_v25 = vmul.f32 %v818_v11, %v813_v22 }
 0x1ec   : > { %v823_v31 = vadd.f32 %v822_v28, %v819_v25 }
 0x1ee   : > { %846 = vmatmul.f32.vlgmr.msrb.gmra.mxu1 %v823_v31  ;;  %866 = vmatmul.f32.vlgmr.msra.gmra.mxu2 %v823_v31  ;;  %v915_v6 = vmul.f32 %v914_v3, %v823_v31 }
 0x1ef   : > { %886 = vmatmul.f32.vlgmr.msra.gmra.mxu3 %v823_v31  ;;  %962 = vmatmul.f32.gmra.mxu0 %v823_v31 }
 0x26b   : > { %v847_v34 = vpop.f32.mrf.mxu1 }
 0x26c   : > { %v848_v37 = vadd.f32 %v847_v34, %v2048_v23  ;;  %v963_v39 = vpop.f32.mrf.mxu0 }
 0x26d   : > { %v964_v43 = vadd.f32 %v2075_v20, %v963_v39 }
 0x26e   : > { %v890_v48 = vadd.f32 %v848_v37, %v2046_v14  ;;  %v574_v14 = vadd.f32 %v2070_v12, %v2063_v44 }
 0x26f   : > { %970 = vst [vmem:[%s1789_s17 + $0x8] sm:$0xff] %v964_v43 }
 0x270   : > { %v891_v50 = vmul.f32 0.5, %v890_v48 }
 0x271   : > { %v867_v51 = vpop.f32.mrf.mxu2 }
 0x272   : > { %1282 = vtanh.f32 %v891_v50  ;;  %v868_v53 = vadd.f32 %v867_v51, %v2051_v38  ;;  %v887_v60 = vpop.f32.mrf.mxu3 }
 0x273   : > { %v888_v23 = vadd.f32 %v887_v60, %v2061_v41  ;;  %v911_v41 = vstv %s910_s3 }
 0x274   : > { %v895_v54 = vadd.f32 %v868_v53, %v2056_v19 }
 0x276   : > { %v896_v56 = vmul.f32 0.5, %v895_v54 }
 0x278   : > { %v1283_v57 = vpop.eup %1282  ;;  %1284 = vtanh.f32 %v896_v56 }
 0x279   : > { %v893_v61 = vadd.f32 1.0, %v1283_v57 }
 0x27b   : > { %v894_v63 = vmul.f32 0.5, %v893_v61 }
 0x27d   : > { %v900_v0 = vmul.f32 %v894_v63, %v888_v23 }
 0x27e   : > { %v1285_v2 = vpop.eup %1284 }
 0x27f   : > { %v898_v4 = vadd.f32 1.0, %v1285_v2  ;;  %v901_v38 = vadd.f32 %v900_v0, %v574_v14 }
 0x281   : > { %1286 = vtanh.f32 %v901_v38  ;;  %v899_v19 = vmul.f32 0.5, %v898_v4 }
 0x283   : > { %v903_v47 = vsub.f32 1.0, %v899_v19  ;;  %v905_v9 = vmul.f32 %v899_v19, %v823_v31 }
 0x287   : > { %v1287_v7 = vpop.eup %1286 }
 0x288   : > { %v904_v15 = vmul.f32 %v1287_v7, %v903_v47 }
 0x28a   : > { %v906_v5 = vadd.f32 %v905_v9, %v904_v15 }
 0x28c   : > { %v912_v44 = vmul.f32 %v911_v41, %v906_v5 }
 0x28e   : > { %v916_v8 = vadd.f32 %v915_v6, %v912_v44 }
 0x290   : > { %919 = vst [vmem:[#allocation4] sm:$0xff] %v916_v8  ;;  %965 = vmatmul.f32.gmra.mxu0 %v916_v8 }
 0x291   : > { %972 = vst [vmem:[#allocation17] sm:$0xff] %v916_v8 }
 0x292   : > { %1183 = dma.vmem_to_hbm [thread:$0]  (%p2173_p13), %s1002_s28, 128, %s1004_s24, [#allocation18]  }
 0x30d   : > { %v966_v12 = vpop.f32.mrf.mxu0 }
 0x30e   : > { %v967_v16 = vadd.f32 %v2075_v20, %v966_v12 }
 0x310   : > { %971 = vst [vmem:[%s1789_s17 + $0x10] sm:$0xff] %v967_v16 }
 0x311   : > { %1523 = shalt.err (!%p1520_p5)
}
 0x312   : > { %s1590_s5 = smov 128   ;;  %s1591_s17 = smov 8  }
 0x313   : > { %1181 = dma.vmem_to_hbm [thread:$0]  (%p1733_p0), %s987_s27, 384, %s989_s25, %s974_s15, %s1590_s5, %s1590_s5, %s1591_s17  }
 0x314   : > { %p2174_p3 = pmov %p2173_p13 }
 0x316   : > { %1557 = dma.done.wait (%p2174_p3), [#allocation18], 128   ;;  %p2175_p1 = pmov %p2174_p3 }
 0x318   : > { %1559 = vsyncadd (%p2175_p1), [#allocation18], 4294967168 }
 0x319 PF: > { %p1224_p4 = scmp.ge.s32.totalorder %s1578_s12, 2  ;;  %s1020_s23 = sand.u32 1, %s1566_s30  }
 0x31a   : > { %s1021_s24 = scalar_lea.sflag [#allocation7], %s1020_s23 }
 0x31b   : > { %p1208_p11 = pnand %p1224_p4, %p1739_p6 }
 0x31d   : > { %p1209_p13 = pneg %p1208_p11 }
 0x31f   : > { %1561 = dma.done.wait (%p1209_p13), %s1021_s24, 384  }
 0x320   : > { %1563 = vsyncadd (%p1209_p13), %s1021_s24, 4294966912  ;;  %s2176_s21 = sld [smem:[#allocation25_spill]]  ;;  %p27_p0 = scmp.ge.s32.totalorder %s1711_s13, 5  }
 0x321   : > { %s2177_s30 = smov %s1570_s10  ;;  %s2178_s10 = smov %s1574_s11 }
 0x322   : > { %s2180_s12 = smov %s1711_s13  ;;  %29 = sbr.rel (!%p27_p0) target bundleno = 15 (0xf), region = 133 }
 0x326   : > { %s2179_s11 = smov %s2176_s21 }
 0x327   :  { %1027 = vsyncpa [#allocation6], 1 }
 0x328   :  { %1029 = vsyncpa [#allocation6 + $0x1], 1 }
 0x329   :  { %1030 = vsyncpa [#allocation9], 1 }
 0x32a   :  { %1031 = vsyncpa [#allocation12], 1 }
 0x32b   :  { %1032 = vsyncpa [#allocation15], 1 }
 0x32c   :  { %1033 = vsyncpa [#allocation7], 1 }
 0x32d   :  { %1035 = vsyncpa [#allocation7 + $0x1], 1 }
 0x32e   :  { %1036 = vsyncpa [#allocation18], 1 }

</bundles_post_ra>
